<compile_context>
chip_gen: v7x
topology: tpu7x:2x2x1
jax: 0.10.0
libtpu: 0.0.40
codegen_flags: <defaults>
</compile_context>

<pallas_src>
import functools

import jax
import jax.numpy as jnp
from jax.experimental import pallas as pl
from jax.experimental.pallas import tpu as pltpu

MAX_LENGTH = 100  # module's self.max_length; PyTorch loop breaks when l > max_length


def _gru_kernel(x_ref, win_ref, bin_ref, wh_ref, bh_ref, wfc_ref, bfc_ref,
                out_ref, ti_ref, tin_ref, *, batch, n_steps):
    """x_ref: (n_steps*B, E) time-major flattened   win_ref: (E, 3H)
       bin_ref: (1, 3H)  wh_ref: (H, 3H)  bh_ref: (1, 3H)
       wfc_ref: (H, C)   bfc_ref: (1, C)  out_ref: (B, C)
       ti_ref / tin_ref: VMEM scratch (n_steps*B, 3H) f32 (precomputed input
       projection and its row-normalized variant)."""
    B = batch
    H3 = win_ref.shape[1]
    H = H3 // 3

    def row_norm(t):
        # (t - mean) / std with ddof=1 (torch.std default), via one-pass
        # moments and rsqrt (EUP) instead of a serial sqrt+divide chain.
        w = t.shape[-1]
        s1 = jnp.sum(t, axis=-1, keepdims=True)
        s2 = jnp.sum(t * t, axis=-1, keepdims=True)
        m = s1 * (1.0 / w)
        var = (s2 - w * m * m) * (1.0 / (w - 1))
        return (t - m) * jax.lax.rsqrt(var)

    # ---- hoisted input projection: one MXU-filling matmul for all steps ----
    ti_all = (jnp.dot(x_ref[...], win_ref[...],
                      preferred_element_type=jnp.float32) + bin_ref[...])
    ti_ref[...] = ti_all                 # pass 1 uses the raw projection
    tin_ref[...] = row_norm(ti_all)      # pass 2 uses the normalized one

    # ---- loop invariants hoisted out of the recurrence ----
    wh = wh_ref[...]                                    # (H, 3H), vreg-resident
    bh = jnp.broadcast_to(bh_ref[...], (B, H3))         # hoisted broadcast

    def gates(ti, th, hid):
        r = jax.nn.sigmoid(ti[:, :H] + th[:, :H])
        z = jax.nn.sigmoid(ti[:, H:2 * H] + th[:, H:2 * H])
        n = jnp.tanh(ti[:, 2 * H:] + r * th[:, 2 * H:])
        return (1.0 - z) * n + z * hid

    def step(l, hid, ti_src, norm_h):
        th = jnp.dot(hid, wh, preferred_element_type=jnp.float32) + bh
        if norm_h:
            th = row_norm(th)
        ti = ti_src[pl.ds(l * B, B), :]                 # (B, 3H) for timestep l
        return gates(ti, th, hid)

    unroll = True if n_steps <= 32 else 4
    hid0 = jnp.zeros((B, H), jnp.float32)
    # Pass 1: "no norm".
    hid = jax.lax.fori_loop(0, n_steps,
                            lambda l, h: step(l, h, ti_ref, False),
                            hid0, unroll=unroll)
    # Pass 2: "vector norm" (hidden state carries over, as in the module).
    hid = jax.lax.fori_loop(0, n_steps,
                            lambda l, h: step(l, h, tin_ref, True),
                            hid, unroll=unroll)

    out_ref[...] = (jnp.dot(hid, wfc_ref[...],
                            preferred_element_type=jnp.float32) + bfc_ref[...])


def gru_forward(x_ble, w_in, b_in, w_h, b_h, w_fc, b_fc):
    """x_ble: (B, L, E) like PyTorch.  Returns (B, num_classes)."""
    B, L, E = x_ble.shape
    H = w_h.shape[1]
    H3 = 3 * H
    C = w_fc.shape[0]
    n_steps = min(L, MAX_LENGTH + 1)   # PyTorch breaks only when l > max_length

    # Time-major flatten so each step's batch rows are contiguous:
    # row index = l*B + b.
    x_flat = (jnp.transpose(x_ble[:, :n_steps, :], (1, 0, 2))
              .reshape(n_steps * B, E).astype(jnp.float32))

    kernel = functools.partial(_gru_kernel, batch=B, n_steps=n_steps)
    return pl.pallas_call(
        kernel,
        out_shape=jax.ShapeDtypeStruct((B, C), jnp.float32),
        scratch_shapes=[pltpu.VMEM((n_steps * B, H3), jnp.float32),
                        pltpu.VMEM((n_steps * B, H3), jnp.float32)],
    )(x_flat,
      w_in.T.astype(jnp.float32), b_in.reshape(1, -1).astype(jnp.float32),
      w_h.T.astype(jnp.float32), b_h.reshape(1, -1).astype(jnp.float32),
      w_fc.T.astype(jnp.float32), b_fc.reshape(1, -1).astype(jnp.float32))


def _ref_forward(x, w_in, b_in, w_h, b_h, w_fc, b_fc):
    """Pure-JAX reference replicating the PyTorch forward exactly."""
    B, L, E = x.shape
    H = w_h.shape[1]
    hid = jnp.zeros((B, H), jnp.float32)

    def step(hid, x_t, norm):
        tmp_i = x_t @ w_in.T + b_in
        tmp_h = hid @ w_h.T + b_h
        if norm:
            def vn(t):
                m = t.mean(-1, keepdims=True)
                s = jnp.sqrt(jnp.sum((t - m) ** 2, -1, keepdims=True)
                             / (t.shape[-1] - 1))           # torch.std, ddof=1
                return (t - m) / s
            tmp_i, tmp_h = vn(tmp_i), vn(tmp_h)
        r_i, z_i, n_i = jnp.split(tmp_i, 3, axis=1)
        r_h, z_h, n_h = jnp.split(tmp_h, 3, axis=1)
        r = jax.nn.sigmoid(r_i + r_h)
        z = jax.nn.sigmoid(z_i + z_h)
        n = jnp.tanh(n_i + r * n_h)
        return (1.0 - z) * n + z * hid

    n_steps = min(L, MAX_LENGTH + 1)
    for l in range(n_steps):
        hid = step(hid, x[:, l, :], False)
    for l in range(n_steps):
        hid = step(hid, x[:, l, :], True)
    return hid @ w_fc.T + b_fc


if __name__ == "__main__":
    # Shapes consistent with the module: ebd_size hard-coded to 100,
    # hidden_size default 64, num_of_classes = 2; small batch/seq for the demo.
    B, L, E, H, C = 2, 8, 100, 64, 2

    key = jax.random.PRNGKey(0)
    k_x, k_wi, k_bi, k_wh, k_bh, k_wf, k_bf = jax.random.split(key, 7)

    x = jax.random.normal(k_x, (B, L, E), jnp.float32)

    # PyTorch-convention parameter shapes (deterministic synthetic init).
    w_in = jax.random.normal(k_wi, (3 * H, E), jnp.float32) * 0.1   # cell_linear_in
    b_in = jax.random.normal(k_bi, (3 * H,), jnp.float32) * 0.1
    w_h = jax.random.normal(k_wh, (3 * H, H), jnp.float32) * 0.1    # cell_linear_hidden
    b_h = jax.random.normal(k_bh, (3 * H,), jnp.float32) * 0.1
    w_fc = jax.random.normal(k_wf, (C, H), jnp.float32) * 0.1       # fc
    b_fc = jax.random.normal(k_bf, (C,), jnp.float32) * 0.1

    out = gru_forward(x, w_in, b_in, w_h, b_h, w_fc, b_fc)
    out = jax.block_until_ready(out)

    ref = _ref_forward(x, w_in, b_in, w_h, b_h, w_fc, b_fc)
    assert out.shape == (B, C)
    assert jnp.allclose(out, ref, rtol=2e-4, atol=2e-4), (out, ref)

    print("KERNEL_OK")
</pallas_src>

<mosaic_0001>
module attributes {stable_mosaic.version = 11 : i64} {
  func.func @_gru_kernel(%arg0: memref<16x100xf32, #tpu.memory_space<vmem>>, %arg1: memref<100x192xf32, #tpu.memory_space<vmem>>, %arg2: memref<1x192xf32, #tpu.memory_space<vmem>>, %arg3: memref<64x192xf32, #tpu.memory_space<vmem>>, %arg4: memref<1x192xf32, #tpu.memory_space<vmem>>, %arg5: memref<64x2xf32, #tpu.memory_space<vmem>>, %arg6: memref<1x2xf32, #tpu.memory_space<vmem>>, %arg7: memref<2x2xf32, #tpu.memory_space<vmem>>, %arg8: memref<16x192xf32, #tpu.memory_space<vmem>>, %arg9: memref<16x192xf32, #tpu.memory_space<vmem>>) attributes {dimension_semantics = [], scalar_prefetch = 0 : i64, scratch_operands = 2 : i64, tpu.core_type = #tpu.core_type<tc>} {
    %c0 = arith.constant 0 : index
    %c0_0 = arith.constant 0 : index
    %0 = vector.load %arg0[%c0, %c0_0] : memref<16x100xf32, #tpu.memory_space<vmem>>, vector<16x100xf32>
    %c0_1 = arith.constant 0 : index
    %c0_2 = arith.constant 0 : index
    %1 = vector.load %arg1[%c0_1, %c0_2] : memref<100x192xf32, #tpu.memory_space<vmem>>, vector<100x192xf32>
    %cst = arith.constant dense<0.000000e+00> : vector<16x192xf32>
    %2 = tpu.matmul %0, %1, %cst {dimension_numbers = #tpu.dot_dimension_numbers<[1], [0], [0], [1], [0, 0, 1, 1], [], []>} : vector<16x100xf32>, vector<100x192xf32>, vector<16x192xf32> -> vector<16x192xf32>
    %c0_3 = arith.constant 0 : index
    %c0_4 = arith.constant 0 : index
    %3 = vector.load %arg2[%c0_3, %c0_4] : memref<1x192xf32, #tpu.memory_space<vmem>>, vector<1x192xf32>
    %4 = vector.broadcast %3 : vector<1x192xf32> to vector<16x192xf32>
    %5 = arith.addf %2, %4 : vector<16x192xf32>
    %c0_5 = arith.constant 0 : index
    %c0_6 = arith.constant 0 : index
    %6 = vector.load %arg8[%c0_5, %c0_6] : memref<16x192xf32, #tpu.memory_space<vmem>>, vector<16x192xf32>
    tpu.vector_store %arg8[%c0_5, %c0_6], %5 {strides = array<i32>} : memref<16x192xf32, #tpu.memory_space<vmem>>, vector<16x192xf32>,
    %cst_7 = arith.constant dense<0.000000e+00> : vector<16xf32>
    %7 = vector.multi_reduction <add>, %5, %cst_7 [1] : vector<16x192xf32> to vector<16xf32>
    %8 = vector.shape_cast %7 : vector<16xf32> to vector<16x1xf32>
    %9 = arith.mulf %5, %5 : vector<16x192xf32>
    %cst_8 = arith.constant dense<0.000000e+00> : vector<16xf32>
    %10 = vector.multi_reduction <add>, %9, %cst_8 [1] : vector<16x192xf32> to vector<16xf32>
    %11 = vector.shape_cast %10 : vector<16xf32> to vector<16x1xf32>
    %cst_9 = arith.constant 0.00520833349 : f32
    %12 = vector.broadcast %cst_9 : f32 to vector<16x1xf32>
    %13 = arith.mulf %8, %12 : vector<16x1xf32>
    %cst_10 = arith.constant 1.920000e+02 : f32
    %14 = vector.broadcast %cst_10 : f32 to vector<16x1xf32>
    %15 = arith.mulf %14, %13 : vector<16x1xf32>
    %16 = arith.mulf %15, %13 : vector<16x1xf32>
    %17 = arith.subf %11, %16 : vector<16x1xf32>
    %cst_11 = arith.constant 0.00523560215 : f32
    %18 = vector.broadcast %cst_11 : f32 to vector<16x1xf32>
    %19 = arith.mulf %17, %18 : vector<16x1xf32>
    %20 = vector.broadcast %13 : vector<16x1xf32> to vector<16x192xf32>
    %21 = arith.subf %5, %20 : vector<16x192xf32>
    %22 = math.rsqrt %19 : vector<16x1xf32>
    %23 = vector.broadcast %22 : vector<16x1xf32> to vector<16x192xf32>
    %24 = arith.mulf %21, %23 : vector<16x192xf32>
    %c0_12 = arith.constant 0 : index
    %c0_13 = arith.constant 0 : index
    %25 = vector.load %arg9[%c0_12, %c0_13] : memref<16x192xf32, #tpu.memory_space<vmem>>, vector<16x192xf32>
    tpu.vector_store %arg9[%c0_12, %c0_13], %24 {strides = array<i32>} : memref<16x192xf32, #tpu.memory_space<vmem>>, vector<16x192xf32>,
    %c0_14 = arith.constant 0 : index
    %c0_15 = arith.constant 0 : index
    %26 = vector.load %arg3[%c0_14, %c0_15] : memref<64x192xf32, #tpu.memory_space<vmem>>, vector<64x192xf32>
    %c0_16 = arith.constant 0 : index
    %c0_17 = arith.constant 0 : index
    %27 = vector.load %arg4[%c0_16, %c0_17] : memref<1x192xf32, #tpu.memory_space<vmem>>, vector<1x192xf32>
    %28 = vector.shape_cast %27 : vector<1x192xf32> to vector<1x192xf32>
    %29 = vector.broadcast %28 : vector<1x192xf32> to vector<2x192xf32>
    %cst_18 = arith.constant 0.000000e+00 : f32
    %30 = vector.broadcast %cst_18 : f32 to vector<2x64xf32>
    %c0_i32 = arith.constant 0 : i32
    %cst_19 = arith.constant dense<0.000000e+00> : vector<2x192xf32>
    %31 = tpu.matmul %30, %26, %cst_19 {dimension_numbers = #tpu.dot_dimension_numbers<[1], [0], [0], [1], [0, 0, 1, 1], [], []>} : vector<2x64xf32>, vector<64x192xf32>, vector<2x192xf32> -> vector<2x192xf32>
    %32 = arith.addf %31, %29 : vector<2x192xf32>
    %c2_i32 = arith.constant 2 : i32
    %33 = arith.muli %c0_i32, %c2_i32 : i32
    %34 = arith.index_cast %33 : i32 to index
    %c0_20 = arith.constant 0 : index
    %35 = vector.load %arg8[%34, %c0_20] : memref<16x192xf32, #tpu.memory_space<vmem>>, vector<2x192xf32>
    %36 = vector.extract_strided_slice %35 {offsets = [0, 0], sizes = [2, 64], strides = [1, 1]} : vector<2x192xf32> to vector<2x64xf32>
    %37 = vector.extract_strided_slice %32 {offsets = [0, 0], sizes = [2, 64], strides = [1, 1]} : vector<2x192xf32> to vector<2x64xf32>
    %38 = arith.addf %36, %37 : vector<2x64xf32>
    %39 = arith.negf %38 : vector<2x64xf32>
    %40 = math.exp %39 : vector<2x64xf32>
    %cst_21 = arith.constant 1.000000e+00 : f32
    %41 = vector.broadcast %cst_21 : f32 to vector<2x64xf32>
    %42 = arith.addf %41, %40 : vector<2x64xf32>
    %43 = arith.divf %41, %42 : vector<2x64xf32>
    %44 = vector.extract_strided_slice %35 {offsets = [0, 64], sizes = [2, 64], strides = [1, 1]} : vector<2x192xf32> to vector<2x64xf32>
    %45 = vector.extract_strided_slice %32 {offsets = [0, 64], sizes = [2, 64], strides = [1, 1]} : vector<2x192xf32> to vector<2x64xf32>
    %46 = arith.addf %44, %45 : vector<2x64xf32>
    %47 = arith.negf %46 : vector<2x64xf32>
    %48 = math.exp %47 : vector<2x64xf32>
    %cst_22 = arith.constant 1.000000e+00 : f32
    %49 = vector.broadcast %cst_22 : f32 to vector<2x64xf32>
    %50 = arith.addf %49, %48 : vector<2x64xf32>
    %51 = arith.divf %49, %50 : vector<2x64xf32>
    %52 = vector.extract_strided_slice %35 {offsets = [0, 128], sizes = [2, 64], strides = [1, 1]} : vector<2x192xf32> to vector<2x64xf32>
    %53 = vector.extract_strided_slice %32 {offsets = [0, 128], sizes = [2, 64], strides = [1, 1]} : vector<2x192xf32> to vector<2x64xf32>
    %54 = arith.mulf %43, %53 : vector<2x64xf32>
    %55 = arith.addf %52, %54 : vector<2x64xf32>
    %56 = math.tanh %55 : vector<2x64xf32>
    %cst_23 = arith.constant 1.000000e+00 : f32
    %57 = vector.broadcast %cst_23 : f32 to vector<2x64xf32>
    %58 = arith.subf %57, %51 : vector<2x64xf32>
    %59 = arith.mulf %58, %56 : vector<2x64xf32>
    %60 = arith.mulf %51, %30 : vector<2x64xf32>
    %61 = arith.addf %59, %60 : vector<2x64xf32>
    %c1_i32 = arith.constant 1 : i32
    %cst_24 = arith.constant dense<0.000000e+00> : vector<2x192xf32>
    %62 = tpu.matmul %61, %26, %cst_24 {dimension_numbers = #tpu.dot_dimension_numbers<[1], [0], [0], [1], [0, 0, 1, 1], [], []>} : vector<2x64xf32>, vector<64x192xf32>, vector<2x192xf32> -> vector<2x192xf32>
    %63 = arith.addf %62, %29 : vector<2x192xf32>
    %c2_i32_25 = arith.constant 2 : i32
    %64 = arith.muli %c1_i32, %c2_i32_25 : i32
    %65 = arith.index_cast %64 : i32 to index
    %c0_26 = arith.constant 0 : index
    %66 = vector.load %arg8[%65, %c0_26] : memref<16x192xf32, #tpu.memory_space<vmem>>, vector<2x192xf32>
    %67 = vector.extract_strided_slice %66 {offsets = [0, 0], sizes = [2, 64], strides = [1, 1]} : vector<2x192xf32> to vector<2x64xf32>
    %68 = vector.extract_strided_slice %63 {offsets = [0, 0], sizes = [2, 64], strides = [1, 1]} : vector<2x192xf32> to vector<2x64xf32>
    %69 = arith.addf %67, %68 : vector<2x64xf32>
    %70 = arith.negf %69 : vector<2x64xf32>
    %71 = math.exp %70 : vector<2x64xf32>
    %cst_27 = arith.constant 1.000000e+00 : f32
    %72 = vector.broadcast %cst_27 : f32 to vector<2x64xf32>
    %73 = arith.addf %72, %71 : vector<2x64xf32>
    %74 = arith.divf %72, %73 : vector<2x64xf32>
    %75 = vector.extract_strided_slice %66 {offsets = [0, 64], sizes = [2, 64], strides = [1, 1]} : vector<2x192xf32> to vector<2x64xf32>
    %76 = vector.extract_strided_slice %63 {offsets = [0, 64], sizes = [2, 64], strides = [1, 1]} : vector<2x192xf32> to vector<2x64xf32>
    %77 = arith.addf %75, %76 : vector<2x64xf32>
    %78 = arith.negf %77 : vector<2x64xf32>
    %79 = math.exp %78 : vector<2x64xf32>
    %cst_28 = arith.constant 1.000000e+00 : f32
    %80 = vector.broadcast %cst_28 : f32 to vector<2x64xf32>
    %81 = arith.addf %80, %79 : vector<2x64xf32>
    %82 = arith.divf %80, %81 : vector<2x64xf32>
    %83 = vector.extract_strided_slice %66 {offsets = [0, 128], sizes = [2, 64], strides = [1, 1]} : vector<2x192xf32> to vector<2x64xf32>
    %84 = vector.extract_strided_slice %63 {offsets = [0, 128], sizes = [2, 64], strides = [1, 1]} : vector<2x192xf32> to vector<2x64xf32>
    %85 = arith.mulf %74, %84 : vector<2x64xf32>
    %86 = arith.addf %83, %85 : vector<2x64xf32>
    %87 = math.tanh %86 : vector<2x64xf32>
    %cst_29 = arith.constant 1.000000e+00 : f32
    %88 = vector.broadcast %cst_29 : f32 to vector<2x64xf32>
    %89 = arith.subf %88, %82 : vector<2x64xf32>
    %90 = arith.mulf %89, %87 : vector<2x64xf32>
    %91 = arith.mulf %82, %61 : vector<2x64xf32>
    %92 = arith.addf %90, %91 : vector<2x64xf32>
    %c2_i32_30 = arith.constant 2 : i32
    %cst_31 = arith.constant dense<0.000000e+00> : vector<2x192xf32>
    %93 = tpu.matmul %92, %26, %cst_31 {dimension_numbers = #tpu.dot_dimension_numbers<[1], [0], [0], [1], [0, 0, 1, 1], [], []>} : vector<2x64xf32>, vector<64x192xf32>, vector<2x192xf32> -> vector<2x192xf32>
    %94 = arith.addf %93, %29 : vector<2x192xf32>
    %c2_i32_32 = arith.constant 2 : i32
    %95 = arith.muli %c2_i32_30, %c2_i32_32 : i32
    %96 = arith.index_cast %95 : i32 to index
    %c0_33 = arith.constant 0 : index
    %97 = vector.load %arg8[%96, %c0_33] : memref<16x192xf32, #tpu.memory_space<vmem>>, vector<2x192xf32>
    %98 = vector.extract_strided_slice %97 {offsets = [0, 0], sizes = [2, 64], strides = [1, 1]} : vector<2x192xf32> to vector<2x64xf32>
    %99 = vector.extract_strided_slice %94 {offsets = [0, 0], sizes = [2, 64], strides = [1, 1]} : vector<2x192xf32> to vector<2x64xf32>
    %100 = arith.addf %98, %99 : vector<2x64xf32>
    %101 = arith.negf %100 : vector<2x64xf32>
    %102 = math.exp %101 : vector<2x64xf32>
    %cst_34 = arith.constant 1.000000e+00 : f32
    %103 = vector.broadcast %cst_34 : f32 to vector<2x64xf32>
    %104 = arith.addf %103, %102 : vector<2x64xf32>
    %105 = arith.divf %103, %104 : vector<2x64xf32>
    %106 = vector.extract_strided_slice %97 {offsets = [0, 64], sizes = [2, 64], strides = [1, 1]} : vector<2x192xf32> to vector<2x64xf32>
    %107 = vector.extract_strided_slice %94 {offsets = [0, 64], sizes = [2, 64], strides = [1, 1]} : vector<2x192xf32> to vector<2x64xf32>
    %108 = arith.addf %106, %107 : vector<2x64xf32>
    %109 = arith.negf %108 : vector<2x64xf32>
    %110 = math.exp %109 : vector<2x64xf32>
    %cst_35 = arith.constant 1.000000e+00 : f32
    %111 = vector.broadcast %cst_35 : f32 to vector<2x64xf32>
    %112 = arith.addf %111, %110 : vector<2x64xf32>
    %113 = arith.divf %111, %112 : vector<2x64xf32>
    %114 = vector.extract_strided_slice %97 {offsets = [0, 128], sizes = [2, 64], strides = [1, 1]} : vector<2x192xf32> to vector<2x64xf32>
    %115 = vector.extract_strided_slice %94 {offsets = [0, 128], sizes = [2, 64], strides = [1, 1]} : vector<2x192xf32> to vector<2x64xf32>
    %116 = arith.mulf %105, %115 : vector<2x64xf32>
    %117 = arith.addf %114, %116 : vector<2x64xf32>
    %118 = math.tanh %117 : vector<2x64xf32>
    %cst_36 = arith.constant 1.000000e+00 : f32
    %119 = vector.broadcast %cst_36 : f32 to vector<2x64xf32>
    %120 = arith.subf %119, %113 : vector<2x64xf32>
    %121 = arith.mulf %120, %118 : vector<2x64xf32>
    %122 = arith.mulf %113, %92 : vector<2x64xf32>
    %123 = arith.addf %121, %122 : vector<2x64xf32>
    %c3_i32 = arith.constant 3 : i32
    %cst_37 = arith.constant dense<0.000000e+00> : vector<2x192xf32>
    %124 = tpu.matmul %123, %26, %cst_37 {dimension_numbers = #tpu.dot_dimension_numbers<[1], [0], [0], [1], [0, 0, 1, 1], [], []>} : vector<2x64xf32>, vector<64x192xf32>, vector<2x192xf32> -> vector<2x192xf32>
    %125 = arith.addf %124, %29 : vector<2x192xf32>
    %c2_i32_38 = arith.constant 2 : i32
    %126 = arith.muli %c3_i32, %c2_i32_38 : i32
    %127 = arith.index_cast %126 : i32 to index
    %c0_39 = arith.constant 0 : index
    %128 = vector.load %arg8[%127, %c0_39] : memref<16x192xf32, #tpu.memory_space<vmem>>, vector<2x192xf32>
    %129 = vector.extract_strided_slice %128 {offsets = [0, 0], sizes = [2, 64], strides = [1, 1]} : vector<2x192xf32> to vector<2x64xf32>
    %130 = vector.extract_strided_slice %125 {offsets = [0, 0], sizes = [2, 64], strides = [1, 1]} : vector<2x192xf32> to vector<2x64xf32>
    %131 = arith.addf %129, %130 : vector<2x64xf32>
    %132 = arith.negf %131 : vector<2x64xf32>
    %133 = math.exp %132 : vector<2x64xf32>
    %cst_40 = arith.constant 1.000000e+00 : f32
    %134 = vector.broadcast %cst_40 : f32 to vector<2x64xf32>
    %135 = arith.addf %134, %133 : vector<2x64xf32>
    %136 = arith.divf %134, %135 : vector<2x64xf32>
    %137 = vector.extract_strided_slice %128 {offsets = [0, 64], sizes = [2, 64], strides = [1, 1]} : vector<2x192xf32> to vector<2x64xf32>
    %138 = vector.extract_strided_slice %125 {offsets = [0, 64], sizes = [2, 64], strides = [1, 1]} : vector<2x192xf32> to vector<2x64xf32>
    %139 = arith.addf %137, %138 : vector<2x64xf32>
    %140 = arith.negf %139 : vector<2x64xf32>
    %141 = math.exp %140 : vector<2x64xf32>
    %cst_41 = arith.constant 1.000000e+00 : f32
    %142 = vector.broadcast %cst_41 : f32 to vector<2x64xf32>
    %143 = arith.addf %142, %141 : vector<2x64xf32>
    %144 = arith.divf %142, %143 : vector<2x64xf32>
    %145 = vector.extract_strided_slice %128 {offsets = [0, 128], sizes = [2, 64], strides = [1, 1]} : vector<2x192xf32> to vector<2x64xf32>
    %146 = vector.extract_strided_slice %125 {offsets = [0, 128], sizes = [2, 64], strides = [1, 1]} : vector<2x192xf32> to vector<2x64xf32>
    %147 = arith.mulf %136, %146 : vector<2x64xf32>
    %148 = arith.addf %145, %147 : vector<2x64xf32>
    %149 = math.tanh %148 : vector<2x64xf32>
    %cst_42 = arith.constant 1.000000e+00 : f32
    %150 = vector.broadcast %cst_42 : f32 to vector<2x64xf32>
    %151 = arith.subf %150, %144 : vector<2x64xf32>
    %152 = arith.mulf %151, %149 : vector<2x64xf32>
    %153 = arith.mulf %144, %123 : vector<2x64xf32>
    %154 = arith.addf %152, %153 : vector<2x64xf32>
    %c4_i32 = arith.constant 4 : i32
    %cst_43 = arith.constant dense<0.000000e+00> : vector<2x192xf32>
    %155 = tpu.matmul %154, %26, %cst_43 {dimension_numbers = #tpu.dot_dimension_numbers<[1], [0], [0], [1], [0, 0, 1, 1], [], []>} : vector<2x64xf32>, vector<64x192xf32>, vector<2x192xf32> -> vector<2x192xf32>
    %156 = arith.addf %155, %29 : vector<2x192xf32>
    %c2_i32_44 = arith.constant 2 : i32
    %157 = arith.muli %c4_i32, %c2_i32_44 : i32
    %158 = arith.index_cast %157 : i32 to index
    %c0_45 = arith.constant 0 : index
    %159 = vector.load %arg8[%158, %c0_45] : memref<16x192xf32, #tpu.memory_space<vmem>>, vector<2x192xf32>
    %160 = vector.extract_strided_slice %159 {offsets = [0, 0], sizes = [2, 64], strides = [1, 1]} : vector<2x192xf32> to vector<2x64xf32>
    %161 = vector.extract_strided_slice %156 {offsets = [0, 0], sizes = [2, 64], strides = [1, 1]} : vector<2x192xf32> to vector<2x64xf32>
    %162 = arith.addf %160, %161 : vector<2x64xf32>
    %163 = arith.negf %162 : vector<2x64xf32>
    %164 = math.exp %163 : vector<2x64xf32>
    %cst_46 = arith.constant 1.000000e+00 : f32
    %165 = vector.broadcast %cst_46 : f32 to vector<2x64xf32>
    %166 = arith.addf %165, %164 : vector<2x64xf32>
    %167 = arith.divf %165, %166 : vector<2x64xf32>
    %168 = vector.extract_strided_slice %159 {offsets = [0, 64], sizes = [2, 64], strides = [1, 1]} : vector<2x192xf32> to vector<2x64xf32>
    %169 = vector.extract_strided_slice %156 {offsets = [0, 64], sizes = [2, 64], strides = [1, 1]} : vector<2x192xf32> to vector<2x64xf32>
    %170 = arith.addf %168, %169 : vector<2x64xf32>
    %171 = arith.negf %170 : vector<2x64xf32>
    %172 = math.exp %171 : vector<2x64xf32>
    %cst_47 = arith.constant 1.000000e+00 : f32
    %173 = vector.broadcast %cst_47 : f32 to vector<2x64xf32>
    %174 = arith.addf %173, %172 : vector<2x64xf32>
    %175 = arith.divf %173, %174 : vector<2x64xf32>
    %176 = vector.extract_strided_slice %159 {offsets = [0, 128], sizes = [2, 64], strides = [1, 1]} : vector<2x192xf32> to vector<2x64xf32>
    %177 = vector.extract_strided_slice %156 {offsets = [0, 128], sizes = [2, 64], strides = [1, 1]} : vector<2x192xf32> to vector<2x64xf32>
    %178 = arith.mulf %167, %177 : vector<2x64xf32>
    %179 = arith.addf %176, %178 : vector<2x64xf32>
    %180 = math.tanh %179 : vector<2x64xf32>
    %cst_48 = arith.constant 1.000000e+00 : f32
    %181 = vector.broadcast %cst_48 : f32 to vector<2x64xf32>
    %182 = arith.subf %181, %175 : vector<2x64xf32>
    %183 = arith.mulf %182, %180 : vector<2x64xf32>
    %184 = arith.mulf %175, %154 : vector<2x64xf32>
    %185 = arith.addf %183, %184 : vector<2x64xf32>
    %c5_i32 = arith.constant 5 : i32
    %cst_49 = arith.constant dense<0.000000e+00> : vector<2x192xf32>
    %186 = tpu.matmul %185, %26, %cst_49 {dimension_numbers = #tpu.dot_dimension_numbers<[1], [0], [0], [1], [0, 0, 1, 1], [], []>} : vector<2x64xf32>, vector<64x192xf32>, vector<2x192xf32> -> vector<2x192xf32>
    %187 = arith.addf %186, %29 : vector<2x192xf32>
    %c2_i32_50 = arith.constant 2 : i32
    %188 = arith.muli %c5_i32, %c2_i32_50 : i32
    %189 = arith.index_cast %188 : i32 to index
    %c0_51 = arith.constant 0 : index
    %190 = vector.load %arg8[%189, %c0_51] : memref<16x192xf32, #tpu.memory_space<vmem>>, vector<2x192xf32>
    %191 = vector.extract_strided_slice %190 {offsets = [0, 0], sizes = [2, 64], strides = [1, 1]} : vector<2x192xf32> to vector<2x64xf32>
    %192 = vector.extract_strided_slice %187 {offsets = [0, 0], sizes = [2, 64], strides = [1, 1]} : vector<2x192xf32> to vector<2x64xf32>
    %193 = arith.addf %191, %192 : vector<2x64xf32>
    %194 = arith.negf %193 : vector<2x64xf32>
    %195 = math.exp %194 : vector<2x64xf32>
    %cst_52 = arith.constant 1.000000e+00 : f32
    %196 = vector.broadcast %cst_52 : f32 to vector<2x64xf32>
    %197 = arith.addf %196, %195 : vector<2x64xf32>
    %198 = arith.divf %196, %197 : vector<2x64xf32>
    %199 = vector.extract_strided_slice %190 {offsets = [0, 64], sizes = [2, 64], strides = [1, 1]} : vector<2x192xf32> to vector<2x64xf32>
    %200 = vector.extract_strided_slice %187 {offsets = [0, 64], sizes = [2, 64], strides = [1, 1]} : vector<2x192xf32> to vector<2x64xf32>
    %201 = arith.addf %199, %200 : vector<2x64xf32>
    %202 = arith.negf %201 : vector<2x64xf32>
    %203 = math.exp %202 : vector<2x64xf32>
    %cst_53 = arith.constant 1.000000e+00 : f32
    %204 = vector.broadcast %cst_53 : f32 to vector<2x64xf32>
    %205 = arith.addf %204, %203 : vector<2x64xf32>
    %206 = arith.divf %204, %205 : vector<2x64xf32>
    %207 = vector.extract_strided_slice %190 {offsets = [0, 128], sizes = [2, 64], strides = [1, 1]} : vector<2x192xf32> to vector<2x64xf32>
    %208 = vector.extract_strided_slice %187 {offsets = [0, 128], sizes = [2, 64], strides = [1, 1]} : vector<2x192xf32> to vector<2x64xf32>
    %209 = arith.mulf %198, %208 : vector<2x64xf32>
    %210 = arith.addf %207, %209 : vector<2x64xf32>
    %211 = math.tanh %210 : vector<2x64xf32>
    %cst_54 = arith.constant 1.000000e+00 : f32
    %212 = vector.broadcast %cst_54 : f32 to vector<2x64xf32>
    %213 = arith.subf %212, %206 : vector<2x64xf32>
    %214 = arith.mulf %213, %211 : vector<2x64xf32>
    %215 = arith.mulf %206, %185 : vector<2x64xf32>
    %216 = arith.addf %214, %215 : vector<2x64xf32>
    %c6_i32 = arith.constant 6 : i32
    %cst_55 = arith.constant dense<0.000000e+00> : vector<2x192xf32>
    %217 = tpu.matmul %216, %26, %cst_55 {dimension_numbers = #tpu.dot_dimension_numbers<[1], [0], [0], [1], [0, 0, 1, 1], [], []>} : vector<2x64xf32>, vector<64x192xf32>, vector<2x192xf32> -> vector<2x192xf32>
    %218 = arith.addf %217, %29 : vector<2x192xf32>
    %c2_i32_56 = arith.constant 2 : i32
    %219 = arith.muli %c6_i32, %c2_i32_56 : i32
    %220 = arith.index_cast %219 : i32 to index
    %c0_57 = arith.constant 0 : index
    %221 = vector.load %arg8[%220, %c0_57] : memref<16x192xf32, #tpu.memory_space<vmem>>, vector<2x192xf32>
    %222 = vector.extract_strided_slice %221 {offsets = [0, 0], sizes = [2, 64], strides = [1, 1]} : vector<2x192xf32> to vector<2x64xf32>
    %223 = vector.extract_strided_slice %218 {offsets = [0, 0], sizes = [2, 64], strides = [1, 1]} : vector<2x192xf32> to vector<2x64xf32>
    %224 = arith.addf %222, %223 : vector<2x64xf32>
    %225 = arith.negf %224 : vector<2x64xf32>
    %226 = math.exp %225 : vector<2x64xf32>
    %cst_58 = arith.constant 1.000000e+00 : f32
    %227 = vector.broadcast %cst_58 : f32 to vector<2x64xf32>
    %228 = arith.addf %227, %226 : vector<2x64xf32>
    %229 = arith.divf %227, %228 : vector<2x64xf32>
    %230 = vector.extract_strided_slice %221 {offsets = [0, 64], sizes = [2, 64], strides = [1, 1]} : vector<2x192xf32> to vector<2x64xf32>
    %231 = vector.extract_strided_slice %218 {offsets = [0, 64], sizes = [2, 64], strides = [1, 1]} : vector<2x192xf32> to vector<2x64xf32>
    %232 = arith.addf %230, %231 : vector<2x64xf32>
    %233 = arith.negf %232 : vector<2x64xf32>
    %234 = math.exp %233 : vector<2x64xf32>
    %cst_59 = arith.constant 1.000000e+00 : f32
    %235 = vector.broadcast %cst_59 : f32 to vector<2x64xf32>
    %236 = arith.addf %235, %234 : vector<2x64xf32>
    %237 = arith.divf %235, %236 : vector<2x64xf32>
    %238 = vector.extract_strided_slice %221 {offsets = [0, 128], sizes = [2, 64], strides = [1, 1]} : vector<2x192xf32> to vector<2x64xf32>
    %239 = vector.extract_strided_slice %218 {offsets = [0, 128], sizes = [2, 64], strides = [1, 1]} : vector<2x192xf32> to vector<2x64xf32>
    %240 = arith.mulf %229, %239 : vector<2x64xf32>
    %241 = arith.addf %238, %240 : vector<2x64xf32>
    %242 = math.tanh %241 : vector<2x64xf32>
    %cst_60 = arith.constant 1.000000e+00 : f32
    %243 = vector.broadcast %cst_60 : f32 to vector<2x64xf32>
    %244 = arith.subf %243, %237 : vector<2x64xf32>
    %245 = arith.mulf %244, %242 : vector<2x64xf32>
    %246 = arith.mulf %237, %216 : vector<2x64xf32>
    %247 = arith.addf %245, %246 : vector<2x64xf32>
    %c7_i32 = arith.constant 7 : i32
    %cst_61 = arith.constant dense<0.000000e+00> : vector<2x192xf32>
    %248 = tpu.matmul %247, %26, %cst_61 {dimension_numbers = #tpu.dot_dimension_numbers<[1], [0], [0], [1], [0, 0, 1, 1], [], []>} : vector<2x64xf32>, vector<64x192xf32>, vector<2x192xf32> -> vector<2x192xf32>
    %249 = arith.addf %248, %29 : vector<2x192xf32>
    %c2_i32_62 = arith.constant 2 : i32
    %250 = arith.muli %c7_i32, %c2_i32_62 : i32
    %251 = arith.index_cast %250 : i32 to index
    %c0_63 = arith.constant 0 : index
    %252 = vector.load %arg8[%251, %c0_63] : memref<16x192xf32, #tpu.memory_space<vmem>>, vector<2x192xf32>
    %253 = vector.extract_strided_slice %252 {offsets = [0, 0], sizes = [2, 64], strides = [1, 1]} : vector<2x192xf32> to vector<2x64xf32>
    %254 = vector.extract_strided_slice %249 {offsets = [0, 0], sizes = [2, 64], strides = [1, 1]} : vector<2x192xf32> to vector<2x64xf32>
    %255 = arith.addf %253, %254 : vector<2x64xf32>
    %256 = arith.negf %255 : vector<2x64xf32>
    %257 = math.exp %256 : vector<2x64xf32>
    %cst_64 = arith.constant 1.000000e+00 : f32
    %258 = vector.broadcast %cst_64 : f32 to vector<2x64xf32>
    %259 = arith.addf %258, %257 : vector<2x64xf32>
    %260 = arith.divf %258, %259 : vector<2x64xf32>
    %261 = vector.extract_strided_slice %252 {offsets = [0, 64], sizes = [2, 64], strides = [1, 1]} : vector<2x192xf32> to vector<2x64xf32>
    %262 = vector.extract_strided_slice %249 {offsets = [0, 64], sizes = [2, 64], strides = [1, 1]} : vector<2x192xf32> to vector<2x64xf32>
    %263 = arith.addf %261, %262 : vector<2x64xf32>
    %264 = arith.negf %263 : vector<2x64xf32>
    %265 = math.exp %264 : vector<2x64xf32>
    %cst_65 = arith.constant 1.000000e+00 : f32
    %266 = vector.broadcast %cst_65 : f32 to vector<2x64xf32>
    %267 = arith.addf %266, %265 : vector<2x64xf32>
    %268 = arith.divf %266, %267 : vector<2x64xf32>
    %269 = vector.extract_strided_slice %252 {offsets = [0, 128], sizes = [2, 64], strides = [1, 1]} : vector<2x192xf32> to vector<2x64xf32>
    %270 = vector.extract_strided_slice %249 {offsets = [0, 128], sizes = [2, 64], strides = [1, 1]} : vector<2x192xf32> to vector<2x64xf32>
    %271 = arith.mulf %260, %270 : vector<2x64xf32>
    %272 = arith.addf %269, %271 : vector<2x64xf32>
    %273 = math.tanh %272 : vector<2x64xf32>
    %cst_66 = arith.constant 1.000000e+00 : f32
    %274 = vector.broadcast %cst_66 : f32 to vector<2x64xf32>
    %275 = arith.subf %274, %268 : vector<2x64xf32>
    %276 = arith.mulf %275, %273 : vector<2x64xf32>
    %277 = arith.mulf %268, %247 : vector<2x64xf32>
    %278 = arith.addf %276, %277 : vector<2x64xf32>
    %c8_i32 = arith.constant 8 : i32
    %c0_i32_67 = arith.constant 0 : i32
    %cst_68 = arith.constant dense<0.000000e+00> : vector<2x192xf32>
    %279 = tpu.matmul %278, %26, %cst_68 {dimension_numbers = #tpu.dot_dimension_numbers<[1], [0], [0], [1], [0, 0, 1, 1], [], []>} : vector<2x64xf32>, vector<64x192xf32>, vector<2x192xf32> -> vector<2x192xf32>
    %280 = arith.addf %279, %29 : vector<2x192xf32>
    %cst_69 = arith.constant dense<0.000000e+00> : vector<2xf32>
    %281 = vector.multi_reduction <add>, %280, %cst_69 [1] : vector<2x192xf32> to vector<2xf32>
    %282 = vector.shape_cast %281 : vector<2xf32> to vector<2x1xf32>
    %283 = arith.mulf %280, %280 : vector<2x192xf32>
    %cst_70 = arith.constant dense<0.000000e+00> : vector<2xf32>
    %284 = vector.multi_reduction <add>, %283, %cst_70 [1] : vector<2x192xf32> to vector<2xf32>
    %285 = vector.shape_cast %284 : vector<2xf32> to vector<2x1xf32>
    %cst_71 = arith.constant 0.00520833349 : f32
    %286 = vector.broadcast %cst_71 : f32 to vector<2x1xf32>
    %287 = arith.mulf %282, %286 : vector<2x1xf32>
    %cst_72 = arith.constant 1.920000e+02 : f32
    %288 = vector.broadcast %cst_72 : f32 to vector<2x1xf32>
    %289 = arith.mulf %288, %287 : vector<2x1xf32>
    %290 = arith.mulf %289, %287 : vector<2x1xf32>
    %291 = arith.subf %285, %290 : vector<2x1xf32>
    %cst_73 = arith.constant 0.00523560215 : f32
    %292 = vector.broadcast %cst_73 : f32 to vector<2x1xf32>
    %293 = arith.mulf %291, %292 : vector<2x1xf32>
    %294 = vector.broadcast %287 : vector<2x1xf32> to vector<2x192xf32>
    %295 = arith.subf %280, %294 : vector<2x192xf32>
    %296 = math.rsqrt %293 : vector<2x1xf32>
    %297 = vector.broadcast %296 : vector<2x1xf32> to vector<2x192xf32>
    %298 = arith.mulf %295, %297 : vector<2x192xf32>
    %c2_i32_74 = arith.constant 2 : i32
    %299 = arith.muli %c0_i32_67, %c2_i32_74 : i32
    %300 = arith.index_cast %299 : i32 to index
    %c0_75 = arith.constant 0 : index
    %301 = vector.load %arg9[%300, %c0_75] : memref<16x192xf32, #tpu.memory_space<vmem>>, vector<2x192xf32>
    %302 = vector.extract_strided_slice %301 {offsets = [0, 0], sizes = [2, 64], strides = [1, 1]} : vector<2x192xf32> to vector<2x64xf32>
    %303 = vector.extract_strided_slice %298 {offsets = [0, 0], sizes = [2, 64], strides = [1, 1]} : vector<2x192xf32> to vector<2x64xf32>
    %304 = arith.addf %302, %303 : vector<2x64xf32>
    %305 = arith.negf %304 : vector<2x64xf32>
    %306 = math.exp %305 : vector<2x64xf32>
    %cst_76 = arith.constant 1.000000e+00 : f32
    %307 = vector.broadcast %cst_76 : f32 to vector<2x64xf32>
    %308 = arith.addf %307, %306 : vector<2x64xf32>
    %309 = arith.divf %307, %308 : vector<2x64xf32>
    %310 = vector.extract_strided_slice %301 {offsets = [0, 64], sizes = [2, 64], strides = [1, 1]} : vector<2x192xf32> to vector<2x64xf32>
    %311 = vector.extract_strided_slice %298 {offsets = [0, 64], sizes = [2, 64], strides = [1, 1]} : vector<2x192xf32> to vector<2x64xf32>
    %312 = arith.addf %310, %311 : vector<2x64xf32>
    %313 = arith.negf %312 : vector<2x64xf32>
    %314 = math.exp %313 : vector<2x64xf32>
    %cst_77 = arith.constant 1.000000e+00 : f32
    %315 = vector.broadcast %cst_77 : f32 to vector<2x64xf32>
    %316 = arith.addf %315, %314 : vector<2x64xf32>
    %317 = arith.divf %315, %316 : vector<2x64xf32>
    %318 = vector.extract_strided_slice %301 {offsets = [0, 128], sizes = [2, 64], strides = [1, 1]} : vector<2x192xf32> to vector<2x64xf32>
    %319 = vector.extract_strided_slice %298 {offsets = [0, 128], sizes = [2, 64], strides = [1, 1]} : vector<2x192xf32> to vector<2x64xf32>
    %320 = arith.mulf %309, %319 : vector<2x64xf32>
    %321 = arith.addf %318, %320 : vector<2x64xf32>
    %322 = math.tanh %321 : vector<2x64xf32>
    %cst_78 = arith.constant 1.000000e+00 : f32
    %323 = vector.broadcast %cst_78 : f32 to vector<2x64xf32>
    %324 = arith.subf %323, %317 : vector<2x64xf32>
    %325 = arith.mulf %324, %322 : vector<2x64xf32>
    %326 = arith.mulf %317, %278 : vector<2x64xf32>
    %327 = arith.addf %325, %326 : vector<2x64xf32>
    %c1_i32_79 = arith.constant 1 : i32
    %cst_80 = arith.constant dense<0.000000e+00> : vector<2x192xf32>
    %328 = tpu.matmul %327, %26, %cst_80 {dimension_numbers = #tpu.dot_dimension_numbers<[1], [0], [0], [1], [0, 0, 1, 1], [], []>} : vector<2x64xf32>, vector<64x192xf32>, vector<2x192xf32> -> vector<2x192xf32>
    %329 = arith.addf %328, %29 : vector<2x192xf32>
    %cst_81 = arith.constant dense<0.000000e+00> : vector<2xf32>
    %330 = vector.multi_reduction <add>, %329, %cst_81 [1] : vector<2x192xf32> to vector<2xf32>
    %331 = vector.shape_cast %330 : vector<2xf32> to vector<2x1xf32>
    %332 = arith.mulf %329, %329 : vector<2x192xf32>
    %cst_82 = arith.constant dense<0.000000e+00> : vector<2xf32>
    %333 = vector.multi_reduction <add>, %332, %cst_82 [1] : vector<2x192xf32> to vector<2xf32>
    %334 = vector.shape_cast %333 : vector<2xf32> to vector<2x1xf32>
    %cst_83 = arith.constant 0.00520833349 : f32
    %335 = vector.broadcast %cst_83 : f32 to vector<2x1xf32>
    %336 = arith.mulf %331, %335 : vector<2x1xf32>
    %cst_84 = arith.constant 1.920000e+02 : f32
    %337 = vector.broadcast %cst_84 : f32 to vector<2x1xf32>
    %338 = arith.mulf %337, %336 : vector<2x1xf32>
    %339 = arith.mulf %338, %336 : vector<2x1xf32>
    %340 = arith.subf %334, %339 : vector<2x1xf32>
    %cst_85 = arith.constant 0.00523560215 : f32
    %341 = vector.broadcast %cst_85 : f32 to vector<2x1xf32>
    %342 = arith.mulf %340, %341 : vector<2x1xf32>
    %343 = vector.broadcast %336 : vector<2x1xf32> to vector<2x192xf32>
    %344 = arith.subf %329, %343 : vector<2x192xf32>
    %345 = math.rsqrt %342 : vector<2x1xf32>
    %346 = vector.broadcast %345 : vector<2x1xf32> to vector<2x192xf32>
    %347 = arith.mulf %344, %346 : vector<2x192xf32>
    %c2_i32_86 = arith.constant 2 : i32
    %348 = arith.muli %c1_i32_79, %c2_i32_86 : i32
    %349 = arith.index_cast %348 : i32 to index
    %c0_87 = arith.constant 0 : index
    %350 = vector.load %arg9[%349, %c0_87] : memref<16x192xf32, #tpu.memory_space<vmem>>, vector<2x192xf32>
    %351 = vector.extract_strided_slice %350 {offsets = [0, 0], sizes = [2, 64], strides = [1, 1]} : vector<2x192xf32> to vector<2x64xf32>
    %352 = vector.extract_strided_slice %347 {offsets = [0, 0], sizes = [2, 64], strides = [1, 1]} : vector<2x192xf32> to vector<2x64xf32>
    %353 = arith.addf %351, %352 : vector<2x64xf32>
    %354 = arith.negf %353 : vector<2x64xf32>
    %355 = math.exp %354 : vector<2x64xf32>
    %cst_88 = arith.constant 1.000000e+00 : f32
    %356 = vector.broadcast %cst_88 : f32 to vector<2x64xf32>
    %357 = arith.addf %356, %355 : vector<2x64xf32>
    %358 = arith.divf %356, %357 : vector<2x64xf32>
    %359 = vector.extract_strided_slice %350 {offsets = [0, 64], sizes = [2, 64], strides = [1, 1]} : vector<2x192xf32> to vector<2x64xf32>
    %360 = vector.extract_strided_slice %347 {offsets = [0, 64], sizes = [2, 64], strides = [1, 1]} : vector<2x192xf32> to vector<2x64xf32>
    %361 = arith.addf %359, %360 : vector<2x64xf32>
    %362 = arith.negf %361 : vector<2x64xf32>
    %363 = math.exp %362 : vector<2x64xf32>
    %cst_89 = arith.constant 1.000000e+00 : f32
    %364 = vector.broadcast %cst_89 : f32 to vector<2x64xf32>
    %365 = arith.addf %364, %363 : vector<2x64xf32>
    %366 = arith.divf %364, %365 : vector<2x64xf32>
    %367 = vector.extract_strided_slice %350 {offsets = [0, 128], sizes = [2, 64], strides = [1, 1]} : vector<2x192xf32> to vector<2x64xf32>
    %368 = vector.extract_strided_slice %347 {offsets = [0, 128], sizes = [2, 64], strides = [1, 1]} : vector<2x192xf32> to vector<2x64xf32>
    %369 = arith.mulf %358, %368 : vector<2x64xf32>
    %370 = arith.addf %367, %369 : vector<2x64xf32>
    %371 = math.tanh %370 : vector<2x64xf32>
    %cst_90 = arith.constant 1.000000e+00 : f32
    %372 = vector.broadcast %cst_90 : f32 to vector<2x64xf32>
    %373 = arith.subf %372, %366 : vector<2x64xf32>
    %374 = arith.mulf %373, %371 : vector<2x64xf32>
    %375 = arith.mulf %366, %327 : vector<2x64xf32>
    %376 = arith.addf %374, %375 : vector<2x64xf32>
    %c2_i32_91 = arith.constant 2 : i32
    %cst_92 = arith.constant dense<0.000000e+00> : vector<2x192xf32>
    %377 = tpu.matmul %376, %26, %cst_92 {dimension_numbers = #tpu.dot_dimension_numbers<[1], [0], [0], [1], [0, 0, 1, 1], [], []>} : vector<2x64xf32>, vector<64x192xf32>, vector<2x192xf32> -> vector<2x192xf32>
    %378 = arith.addf %377, %29 : vector<2x192xf32>
    %cst_93 = arith.constant dense<0.000000e+00> : vector<2xf32>
    %379 = vector.multi_reduction <add>, %378, %cst_93 [1] : vector<2x192xf32> to vector<2xf32>
    %380 = vector.shape_cast %379 : vector<2xf32> to vector<2x1xf32>
    %381 = arith.mulf %378, %378 : vector<2x192xf32>
    %cst_94 = arith.constant dense<0.000000e+00> : vector<2xf32>
    %382 = vector.multi_reduction <add>, %381, %cst_94 [1] : vector<2x192xf32> to vector<2xf32>
    %383 = vector.shape_cast %382 : vector<2xf32> to vector<2x1xf32>
    %cst_95 = arith.constant 0.00520833349 : f32
    %384 = vector.broadcast %cst_95 : f32 to vector<2x1xf32>
    %385 = arith.mulf %380, %384 : vector<2x1xf32>
    %cst_96 = arith.constant 1.920000e+02 : f32
    %386 = vector.broadcast %cst_96 : f32 to vector<2x1xf32>
    %387 = arith.mulf %386, %385 : vector<2x1xf32>
    %388 = arith.mulf %387, %385 : vector<2x1xf32>
    %389 = arith.subf %383, %388 : vector<2x1xf32>
    %cst_97 = arith.constant 0.00523560215 : f32
    %390 = vector.broadcast %cst_97 : f32 to vector<2x1xf32>
    %391 = arith.mulf %389, %390 : vector<2x1xf32>
    %392 = vector.broadcast %385 : vector<2x1xf32> to vector<2x192xf32>
    %393 = arith.subf %378, %392 : vector<2x192xf32>
    %394 = math.rsqrt %391 : vector<2x1xf32>
    %395 = vector.broadcast %394 : vector<2x1xf32> to vector<2x192xf32>
    %396 = arith.mulf %393, %395 : vector<2x192xf32>
    %c2_i32_98 = arith.constant 2 : i32
    %397 = arith.muli %c2_i32_91, %c2_i32_98 : i32
    %398 = arith.index_cast %397 : i32 to index
    %c0_99 = arith.constant 0 : index
    %399 = vector.load %arg9[%398, %c0_99] : memref<16x192xf32, #tpu.memory_space<vmem>>, vector<2x192xf32>
    %400 = vector.extract_strided_slice %399 {offsets = [0, 0], sizes = [2, 64], strides = [1, 1]} : vector<2x192xf32> to vector<2x64xf32>
    %401 = vector.extract_strided_slice %396 {offsets = [0, 0], sizes = [2, 64], strides = [1, 1]} : vector<2x192xf32> to vector<2x64xf32>
    %402 = arith.addf %400, %401 : vector<2x64xf32>
    %403 = arith.negf %402 : vector<2x64xf32>
    %404 = math.exp %403 : vector<2x64xf32>
    %cst_100 = arith.constant 1.000000e+00 : f32
    %405 = vector.broadcast %cst_100 : f32 to vector<2x64xf32>
    %406 = arith.addf %405, %404 : vector<2x64xf32>
    %407 = arith.divf %405, %406 : vector<2x64xf32>
    %408 = vector.extract_strided_slice %399 {offsets = [0, 64], sizes = [2, 64], strides = [1, 1]} : vector<2x192xf32> to vector<2x64xf32>
    %409 = vector.extract_strided_slice %396 {offsets = [0, 64], sizes = [2, 64], strides = [1, 1]} : vector<2x192xf32> to vector<2x64xf32>
    %410 = arith.addf %408, %409 : vector<2x64xf32>
    %411 = arith.negf %410 : vector<2x64xf32>
    %412 = math.exp %411 : vector<2x64xf32>
    %cst_101 = arith.constant 1.000000e+00 : f32
    %413 = vector.broadcast %cst_101 : f32 to vector<2x64xf32>
    %414 = arith.addf %413, %412 : vector<2x64xf32>
    %415 = arith.divf %413, %414 : vector<2x64xf32>
    %416 = vector.extract_strided_slice %399 {offsets = [0, 128], sizes = [2, 64], strides = [1, 1]} : vector<2x192xf32> to vector<2x64xf32>
    %417 = vector.extract_strided_slice %396 {offsets = [0, 128], sizes = [2, 64], strides = [1, 1]} : vector<2x192xf32> to vector<2x64xf32>
    %418 = arith.mulf %407, %417 : vector<2x64xf32>
    %419 = arith.addf %416, %418 : vector<2x64xf32>
    %420 = math.tanh %419 : vector<2x64xf32>
    %cst_102 = arith.constant 1.000000e+00 : f32
    %421 = vector.broadcast %cst_102 : f32 to vector<2x64xf32>
    %422 = arith.subf %421, %415 : vector<2x64xf32>
    %423 = arith.mulf %422, %420 : vector<2x64xf32>
    %424 = arith.mulf %415, %376 : vector<2x64xf32>
    %425 = arith.addf %423, %424 : vector<2x64xf32>
    %c3_i32_103 = arith.constant 3 : i32
    %cst_104 = arith.constant dense<0.000000e+00> : vector<2x192xf32>
    %426 = tpu.matmul %425, %26, %cst_104 {dimension_numbers = #tpu.dot_dimension_numbers<[1], [0], [0], [1], [0, 0, 1, 1], [], []>} : vector<2x64xf32>, vector<64x192xf32>, vector<2x192xf32> -> vector<2x192xf32>
    %427 = arith.addf %426, %29 : vector<2x192xf32>
    %cst_105 = arith.constant dense<0.000000e+00> : vector<2xf32>
    %428 = vector.multi_reduction <add>, %427, %cst_105 [1] : vector<2x192xf32> to vector<2xf32>
    %429 = vector.shape_cast %428 : vector<2xf32> to vector<2x1xf32>
    %430 = arith.mulf %427, %427 : vector<2x192xf32>
    %cst_106 = arith.constant dense<0.000000e+00> : vector<2xf32>
    %431 = vector.multi_reduction <add>, %430, %cst_106 [1] : vector<2x192xf32> to vector<2xf32>
    %432 = vector.shape_cast %431 : vector<2xf32> to vector<2x1xf32>
    %cst_107 = arith.constant 0.00520833349 : f32
    %433 = vector.broadcast %cst_107 : f32 to vector<2x1xf32>
    %434 = arith.mulf %429, %433 : vector<2x1xf32>
    %cst_108 = arith.constant 1.920000e+02 : f32
    %435 = vector.broadcast %cst_108 : f32 to vector<2x1xf32>
    %436 = arith.mulf %435, %434 : vector<2x1xf32>
    %437 = arith.mulf %436, %434 : vector<2x1xf32>
    %438 = arith.subf %432, %437 : vector<2x1xf32>
    %cst_109 = arith.constant 0.00523560215 : f32
    %439 = vector.broadcast %cst_109 : f32 to vector<2x1xf32>
    %440 = arith.mulf %438, %439 : vector<2x1xf32>
    %441 = vector.broadcast %434 : vector<2x1xf32> to vector<2x192xf32>
    %442 = arith.subf %427, %441 : vector<2x192xf32>
    %443 = math.rsqrt %440 : vector<2x1xf32>
    %444 = vector.broadcast %443 : vector<2x1xf32> to vector<2x192xf32>
    %445 = arith.mulf %442, %444 : vector<2x192xf32>
    %c2_i32_110 = arith.constant 2 : i32
    %446 = arith.muli %c3_i32_103, %c2_i32_110 : i32
    %447 = arith.index_cast %446 : i32 to index
    %c0_111 = arith.constant 0 : index
    %448 = vector.load %arg9[%447, %c0_111] : memref<16x192xf32, #tpu.memory_space<vmem>>, vector<2x192xf32>
    %449 = vector.extract_strided_slice %448 {offsets = [0, 0], sizes = [2, 64], strides = [1, 1]} : vector<2x192xf32> to vector<2x64xf32>
    %450 = vector.extract_strided_slice %445 {offsets = [0, 0], sizes = [2, 64], strides = [1, 1]} : vector<2x192xf32> to vector<2x64xf32>
    %451 = arith.addf %449, %450 : vector<2x64xf32>
    %452 = arith.negf %451 : vector<2x64xf32>
    %453 = math.exp %452 : vector<2x64xf32>
    %cst_112 = arith.constant 1.000000e+00 : f32
    %454 = vector.broadcast %cst_112 : f32 to vector<2x64xf32>
    %455 = arith.addf %454, %453 : vector<2x64xf32>
    %456 = arith.divf %454, %455 : vector<2x64xf32>
    %457 = vector.extract_strided_slice %448 {offsets = [0, 64], sizes = [2, 64], strides = [1, 1]} : vector<2x192xf32> to vector<2x64xf32>
    %458 = vector.extract_strided_slice %445 {offsets = [0, 64], sizes = [2, 64], strides = [1, 1]} : vector<2x192xf32> to vector<2x64xf32>
    %459 = arith.addf %457, %458 : vector<2x64xf32>
    %460 = arith.negf %459 : vector<2x64xf32>
    %461 = math.exp %460 : vector<2x64xf32>
    %cst_113 = arith.constant 1.000000e+00 : f32
    %462 = vector.broadcast %cst_113 : f32 to vector<2x64xf32>
    %463 = arith.addf %462, %461 : vector<2x64xf32>
    %464 = arith.divf %462, %463 : vector<2x64xf32>
    %465 = vector.extract_strided_slice %448 {offsets = [0, 128], sizes = [2, 64], strides = [1, 1]} : vector<2x192xf32> to vector<2x64xf32>
    %466 = vector.extract_strided_slice %445 {offsets = [0, 128], sizes = [2, 64], strides = [1, 1]} : vector<2x192xf32> to vector<2x64xf32>
    %467 = arith.mulf %456, %466 : vector<2x64xf32>
    %468 = arith.addf %465, %467 : vector<2x64xf32>
    %469 = math.tanh %468 : vector<2x64xf32>
    %cst_114 = arith.constant 1.000000e+00 : f32
    %470 = vector.broadcast %cst_114 : f32 to vector<2x64xf32>
    %471 = arith.subf %470, %464 : vector<2x64xf32>
    %472 = arith.mulf %471, %469 : vector<2x64xf32>
    %473 = arith.mulf %464, %425 : vector<2x64xf32>
    %474 = arith.addf %472, %473 : vector<2x64xf32>
    %c4_i32_115 = arith.constant 4 : i32
    %cst_116 = arith.constant dense<0.000000e+00> : vector<2x192xf32>
    %475 = tpu.matmul %474, %26, %cst_116 {dimension_numbers = #tpu.dot_dimension_numbers<[1], [0], [0], [1], [0, 0, 1, 1], [], []>} : vector<2x64xf32>, vector<64x192xf32>, vector<2x192xf32> -> vector<2x192xf32>
    %476 = arith.addf %475, %29 : vector<2x192xf32>
    %cst_117 = arith.constant dense<0.000000e+00> : vector<2xf32>
    %477 = vector.multi_reduction <add>, %476, %cst_117 [1] : vector<2x192xf32> to vector<2xf32>
    %478 = vector.shape_cast %477 : vector<2xf32> to vector<2x1xf32>
    %479 = arith.mulf %476, %476 : vector<2x192xf32>
    %cst_118 = arith.constant dense<0.000000e+00> : vector<2xf32>
    %480 = vector.multi_reduction <add>, %479, %cst_118 [1] : vector<2x192xf32> to vector<2xf32>
    %481 = vector.shape_cast %480 : vector<2xf32> to vector<2x1xf32>
    %cst_119 = arith.constant 0.00520833349 : f32
    %482 = vector.broadcast %cst_119 : f32 to vector<2x1xf32>
    %483 = arith.mulf %478, %482 : vector<2x1xf32>
    %cst_120 = arith.constant 1.920000e+02 : f32
    %484 = vector.broadcast %cst_120 : f32 to vector<2x1xf32>
    %485 = arith.mulf %484, %483 : vector<2x1xf32>
    %486 = arith.mulf %485, %483 : vector<2x1xf32>
    %487 = arith.subf %481, %486 : vector<2x1xf32>
    %cst_121 = arith.constant 0.00523560215 : f32
    %488 = vector.broadcast %cst_121 : f32 to vector<2x1xf32>
    %489 = arith.mulf %487, %488 : vector<2x1xf32>
    %490 = vector.broadcast %483 : vector<2x1xf32> to vector<2x192xf32>
    %491 = arith.subf %476, %490 : vector<2x192xf32>
    %492 = math.rsqrt %489 : vector<2x1xf32>
    %493 = vector.broadcast %492 : vector<2x1xf32> to vector<2x192xf32>
    %494 = arith.mulf %491, %493 : vector<2x192xf32>
    %c2_i32_122 = arith.constant 2 : i32
    %495 = arith.muli %c4_i32_115, %c2_i32_122 : i32
    %496 = arith.index_cast %495 : i32 to index
    %c0_123 = arith.constant 0 : index
    %497 = vector.load %arg9[%496, %c0_123] : memref<16x192xf32, #tpu.memory_space<vmem>>, vector<2x192xf32>
    %498 = vector.extract_strided_slice %497 {offsets = [0, 0], sizes = [2, 64], strides = [1, 1]} : vector<2x192xf32> to vector<2x64xf32>
    %499 = vector.extract_strided_slice %494 {offsets = [0, 0], sizes = [2, 64], strides = [1, 1]} : vector<2x192xf32> to vector<2x64xf32>
    %500 = arith.addf %498, %499 : vector<2x64xf32>
    %501 = arith.negf %500 : vector<2x64xf32>
    %502 = math.exp %501 : vector<2x64xf32>
    %cst_124 = arith.constant 1.000000e+00 : f32
    %503 = vector.broadcast %cst_124 : f32 to vector<2x64xf32>
    %504 = arith.addf %503, %502 : vector<2x64xf32>
    %505 = arith.divf %503, %504 : vector<2x64xf32>
    %506 = vector.extract_strided_slice %497 {offsets = [0, 64], sizes = [2, 64], strides = [1, 1]} : vector<2x192xf32> to vector<2x64xf32>
    %507 = vector.extract_strided_slice %494 {offsets = [0, 64], sizes = [2, 64], strides = [1, 1]} : vector<2x192xf32> to vector<2x64xf32>
    %508 = arith.addf %506, %507 : vector<2x64xf32>
    %509 = arith.negf %508 : vector<2x64xf32>
    %510 = math.exp %509 : vector<2x64xf32>
    %cst_125 = arith.constant 1.000000e+00 : f32
    %511 = vector.broadcast %cst_125 : f32 to vector<2x64xf32>
    %512 = arith.addf %511, %510 : vector<2x64xf32>
    %513 = arith.divf %511, %512 : vector<2x64xf32>
    %514 = vector.extract_strided_slice %497 {offsets = [0, 128], sizes = [2, 64], strides = [1, 1]} : vector<2x192xf32> to vector<2x64xf32>
    %515 = vector.extract_strided_slice %494 {offsets = [0, 128], sizes = [2, 64], strides = [1, 1]} : vector<2x192xf32> to vector<2x64xf32>
    %516 = arith.mulf %505, %515 : vector<2x64xf32>
    %517 = arith.addf %514, %516 : vector<2x64xf32>
    %518 = math.tanh %517 : vector<2x64xf32>
    %cst_126 = arith.constant 1.000000e+00 : f32
    %519 = vector.broadcast %cst_126 : f32 to vector<2x64xf32>
    %520 = arith.subf %519, %513 : vector<2x64xf32>
    %521 = arith.mulf %520, %518 : vector<2x64xf32>
    %522 = arith.mulf %513, %474 : vector<2x64xf32>
    %523 = arith.addf %521, %522 : vector<2x64xf32>
    %c5_i32_127 = arith.constant 5 : i32
    %cst_128 = arith.constant dense<0.000000e+00> : vector<2x192xf32>
    %524 = tpu.matmul %523, %26, %cst_128 {dimension_numbers = #tpu.dot_dimension_numbers<[1], [0], [0], [1], [0, 0, 1, 1], [], []>} : vector<2x64xf32>, vector<64x192xf32>, vector<2x192xf32> -> vector<2x192xf32>
    %525 = arith.addf %524, %29 : vector<2x192xf32>
    %cst_129 = arith.constant dense<0.000000e+00> : vector<2xf32>
    %526 = vector.multi_reduction <add>, %525, %cst_129 [1] : vector<2x192xf32> to vector<2xf32>
    %527 = vector.shape_cast %526 : vector<2xf32> to vector<2x1xf32>
    %528 = arith.mulf %525, %525 : vector<2x192xf32>
    %cst_130 = arith.constant dense<0.000000e+00> : vector<2xf32>
    %529 = vector.multi_reduction <add>, %528, %cst_130 [1] : vector<2x192xf32> to vector<2xf32>
    %530 = vector.shape_cast %529 : vector<2xf32> to vector<2x1xf32>
    %cst_131 = arith.constant 0.00520833349 : f32
    %531 = vector.broadcast %cst_131 : f32 to vector<2x1xf32>
    %532 = arith.mulf %527, %531 : vector<2x1xf32>
    %cst_132 = arith.constant 1.920000e+02 : f32
    %533 = vector.broadcast %cst_132 : f32 to vector<2x1xf32>
    %534 = arith.mulf %533, %532 : vector<2x1xf32>
    %535 = arith.mulf %534, %532 : vector<2x1xf32>
    %536 = arith.subf %530, %535 : vector<2x1xf32>
    %cst_133 = arith.constant 0.00523560215 : f32
    %537 = vector.broadcast %cst_133 : f32 to vector<2x1xf32>
    %538 = arith.mulf %536, %537 : vector<2x1xf32>
    %539 = vector.broadcast %532 : vector<2x1xf32> to vector<2x192xf32>
    %540 = arith.subf %525, %539 : vector<2x192xf32>
    %541 = math.rsqrt %538 : vector<2x1xf32>
    %542 = vector.broadcast %541 : vector<2x1xf32> to vector<2x192xf32>
    %543 = arith.mulf %540, %542 : vector<2x192xf32>
    %c2_i32_134 = arith.constant 2 : i32
    %544 = arith.muli %c5_i32_127, %c2_i32_134 : i32
    %545 = arith.index_cast %544 : i32 to index
    %c0_135 = arith.constant 0 : index
    %546 = vector.load %arg9[%545, %c0_135] : memref<16x192xf32, #tpu.memory_space<vmem>>, vector<2x192xf32>
    %547 = vector.extract_strided_slice %546 {offsets = [0, 0], sizes = [2, 64], strides = [1, 1]} : vector<2x192xf32> to vector<2x64xf32>
    %548 = vector.extract_strided_slice %543 {offsets = [0, 0], sizes = [2, 64], strides = [1, 1]} : vector<2x192xf32> to vector<2x64xf32>
    %549 = arith.addf %547, %548 : vector<2x64xf32>
    %550 = arith.negf %549 : vector<2x64xf32>
    %551 = math.exp %550 : vector<2x64xf32>
    %cst_136 = arith.constant 1.000000e+00 : f32
    %552 = vector.broadcast %cst_136 : f32 to vector<2x64xf32>
    %553 = arith.addf %552, %551 : vector<2x64xf32>
    %554 = arith.divf %552, %553 : vector<2x64xf32>
    %555 = vector.extract_strided_slice %546 {offsets = [0, 64], sizes = [2, 64], strides = [1, 1]} : vector<2x192xf32> to vector<2x64xf32>
    %556 = vector.extract_strided_slice %543 {offsets = [0, 64], sizes = [2, 64], strides = [1, 1]} : vector<2x192xf32> to vector<2x64xf32>
    %557 = arith.addf %555, %556 : vector<2x64xf32>
    %558 = arith.negf %557 : vector<2x64xf32>
    %559 = math.exp %558 : vector<2x64xf32>
    %cst_137 = arith.constant 1.000000e+00 : f32
    %560 = vector.broadcast %cst_137 : f32 to vector<2x64xf32>
    %561 = arith.addf %560, %559 : vector<2x64xf32>
    %562 = arith.divf %560, %561 : vector<2x64xf32>
    %563 = vector.extract_strided_slice %546 {offsets = [0, 128], sizes = [2, 64], strides = [1, 1]} : vector<2x192xf32> to vector<2x64xf32>
    %564 = vector.extract_strided_slice %543 {offsets = [0, 128], sizes = [2, 64], strides = [1, 1]} : vector<2x192xf32> to vector<2x64xf32>
    %565 = arith.mulf %554, %564 : vector<2x64xf32>
    %566 = arith.addf %563, %565 : vector<2x64xf32>
    %567 = math.tanh %566 : vector<2x64xf32>
    %cst_138 = arith.constant 1.000000e+00 : f32
    %568 = vector.broadcast %cst_138 : f32 to vector<2x64xf32>
    %569 = arith.subf %568, %562 : vector<2x64xf32>
    %570 = arith.mulf %569, %567 : vector<2x64xf32>
    %571 = arith.mulf %562, %523 : vector<2x64xf32>
    %572 = arith.addf %570, %571 : vector<2x64xf32>
    %c6_i32_139 = arith.constant 6 : i32
    %cst_140 = arith.constant dense<0.000000e+00> : vector<2x192xf32>
    %573 = tpu.matmul %572, %26, %cst_140 {dimension_numbers = #tpu.dot_dimension_numbers<[1], [0], [0], [1], [0, 0, 1, 1], [], []>} : vector<2x64xf32>, vector<64x192xf32>, vector<2x192xf32> -> vector<2x192xf32>
    %574 = arith.addf %573, %29 : vector<2x192xf32>
    %cst_141 = arith.constant dense<0.000000e+00> : vector<2xf32>
    %575 = vector.multi_reduction <add>, %574, %cst_141 [1] : vector<2x192xf32> to vector<2xf32>
    %576 = vector.shape_cast %575 : vector<2xf32> to vector<2x1xf32>
    %577 = arith.mulf %574, %574 : vector<2x192xf32>
    %cst_142 = arith.constant dense<0.000000e+00> : vector<2xf32>
    %578 = vector.multi_reduction <add>, %577, %cst_142 [1] : vector<2x192xf32> to vector<2xf32>
    %579 = vector.shape_cast %578 : vector<2xf32> to vector<2x1xf32>
    %cst_143 = arith.constant 0.00520833349 : f32
    %580 = vector.broadcast %cst_143 : f32 to vector<2x1xf32>
    %581 = arith.mulf %576, %580 : vector<2x1xf32>
    %cst_144 = arith.constant 1.920000e+02 : f32
    %582 = vector.broadcast %cst_144 : f32 to vector<2x1xf32>
    %583 = arith.mulf %582, %581 : vector<2x1xf32>
    %584 = arith.mulf %583, %581 : vector<2x1xf32>
    %585 = arith.subf %579, %584 : vector<2x1xf32>
    %cst_145 = arith.constant 0.00523560215 : f32
    %586 = vector.broadcast %cst_145 : f32 to vector<2x1xf32>
    %587 = arith.mulf %585, %586 : vector<2x1xf32>
    %588 = vector.broadcast %581 : vector<2x1xf32> to vector<2x192xf32>
    %589 = arith.subf %574, %588 : vector<2x192xf32>
    %590 = math.rsqrt %587 : vector<2x1xf32>
    %591 = vector.broadcast %590 : vector<2x1xf32> to vector<2x192xf32>
    %592 = arith.mulf %589, %591 : vector<2x192xf32>
    %c2_i32_146 = arith.constant 2 : i32
    %593 = arith.muli %c6_i32_139, %c2_i32_146 : i32
    %594 = arith.index_cast %593 : i32 to index
    %c0_147 = arith.constant 0 : index
    %595 = vector.load %arg9[%594, %c0_147] : memref<16x192xf32, #tpu.memory_space<vmem>>, vector<2x192xf32>
    %596 = vector.extract_strided_slice %595 {offsets = [0, 0], sizes = [2, 64], strides = [1, 1]} : vector<2x192xf32> to vector<2x64xf32>
    %597 = vector.extract_strided_slice %592 {offsets = [0, 0], sizes = [2, 64], strides = [1, 1]} : vector<2x192xf32> to vector<2x64xf32>
    %598 = arith.addf %596, %597 : vector<2x64xf32>
    %599 = arith.negf %598 : vector<2x64xf32>
    %600 = math.exp %599 : vector<2x64xf32>
    %cst_148 = arith.constant 1.000000e+00 : f32
    %601 = vector.broadcast %cst_148 : f32 to vector<2x64xf32>
    %602 = arith.addf %601, %600 : vector<2x64xf32>
    %603 = arith.divf %601, %602 : vector<2x64xf32>
    %604 = vector.extract_strided_slice %595 {offsets = [0, 64], sizes = [2, 64], strides = [1, 1]} : vector<2x192xf32> to vector<2x64xf32>
    %605 = vector.extract_strided_slice %592 {offsets = [0, 64], sizes = [2, 64], strides = [1, 1]} : vector<2x192xf32> to vector<2x64xf32>
    %606 = arith.addf %604, %605 : vector<2x64xf32>
    %607 = arith.negf %606 : vector<2x64xf32>
    %608 = math.exp %607 : vector<2x64xf32>
    %cst_149 = arith.constant 1.000000e+00 : f32
    %609 = vector.broadcast %cst_149 : f32 to vector<2x64xf32>
    %610 = arith.addf %609, %608 : vector<2x64xf32>
    %611 = arith.divf %609, %610 : vector<2x64xf32>
    %612 = vector.extract_strided_slice %595 {offsets = [0, 128], sizes = [2, 64], strides = [1, 1]} : vector<2x192xf32> to vector<2x64xf32>
    %613 = vector.extract_strided_slice %592 {offsets = [0, 128], sizes = [2, 64], strides = [1, 1]} : vector<2x192xf32> to vector<2x64xf32>
    %614 = arith.mulf %603, %613 : vector<2x64xf32>
    %615 = arith.addf %612, %614 : vector<2x64xf32>
    %616 = math.tanh %615 : vector<2x64xf32>
    %cst_150 = arith.constant 1.000000e+00 : f32
    %617 = vector.broadcast %cst_150 : f32 to vector<2x64xf32>
    %618 = arith.subf %617, %611 : vector<2x64xf32>
    %619 = arith.mulf %618, %616 : vector<2x64xf32>
    %620 = arith.mulf %611, %572 : vector<2x64xf32>
    %621 = arith.addf %619, %620 : vector<2x64xf32>
    %c7_i32_151 = arith.constant 7 : i32
    %cst_152 = arith.constant dense<0.000000e+00> : vector<2x192xf32>
    %622 = tpu.matmul %621, %26, %cst_152 {dimension_numbers = #tpu.dot_dimension_numbers<[1], [0], [0], [1], [0, 0, 1, 1], [], []>} : vector<2x64xf32>, vector<64x192xf32>, vector<2x192xf32> -> vector<2x192xf32>
    %623 = arith.addf %622, %29 : vector<2x192xf32>
    %cst_153 = arith.constant dense<0.000000e+00> : vector<2xf32>
    %624 = vector.multi_reduction <add>, %623, %cst_153 [1] : vector<2x192xf32> to vector<2xf32>
    %625 = vector.shape_cast %624 : vector<2xf32> to vector<2x1xf32>
    %626 = arith.mulf %623, %623 : vector<2x192xf32>
    %cst_154 = arith.constant dense<0.000000e+00> : vector<2xf32>
    %627 = vector.multi_reduction <add>, %626, %cst_154 [1] : vector<2x192xf32> to vector<2xf32>
    %628 = vector.shape_cast %627 : vector<2xf32> to vector<2x1xf32>
    %cst_155 = arith.constant 0.00520833349 : f32
    %629 = vector.broadcast %cst_155 : f32 to vector<2x1xf32>
    %630 = arith.mulf %625, %629 : vector<2x1xf32>
    %cst_156 = arith.constant 1.920000e+02 : f32
    %631 = vector.broadcast %cst_156 : f32 to vector<2x1xf32>
    %632 = arith.mulf %631, %630 : vector<2x1xf32>
    %633 = arith.mulf %632, %630 : vector<2x1xf32>
    %634 = arith.subf %628, %633 : vector<2x1xf32>
    %cst_157 = arith.constant 0.00523560215 : f32
    %635 = vector.broadcast %cst_157 : f32 to vector<2x1xf32>
    %636 = arith.mulf %634, %635 : vector<2x1xf32>
    %637 = vector.broadcast %630 : vector<2x1xf32> to vector<2x192xf32>
    %638 = arith.subf %623, %637 : vector<2x192xf32>
    %639 = math.rsqrt %636 : vector<2x1xf32>
    %640 = vector.broadcast %639 : vector<2x1xf32> to vector<2x192xf32>
    %641 = arith.mulf %638, %640 : vector<2x192xf32>
    %c2_i32_158 = arith.constant 2 : i32
    %642 = arith.muli %c7_i32_151, %c2_i32_158 : i32
    %643 = arith.index_cast %642 : i32 to index
    %c0_159 = arith.constant 0 : index
    %644 = vector.load %arg9[%643, %c0_159] : memref<16x192xf32, #tpu.memory_space<vmem>>, vector<2x192xf32>
    %645 = vector.extract_strided_slice %644 {offsets = [0, 0], sizes = [2, 64], strides = [1, 1]} : vector<2x192xf32> to vector<2x64xf32>
    %646 = vector.extract_strided_slice %641 {offsets = [0, 0], sizes = [2, 64], strides = [1, 1]} : vector<2x192xf32> to vector<2x64xf32>
    %647 = arith.addf %645, %646 : vector<2x64xf32>
    %648 = arith.negf %647 : vector<2x64xf32>
    %649 = math.exp %648 : vector<2x64xf32>
    %cst_160 = arith.constant 1.000000e+00 : f32
    %650 = vector.broadcast %cst_160 : f32 to vector<2x64xf32>
    %651 = arith.addf %650, %649 : vector<2x64xf32>
    %652 = arith.divf %650, %651 : vector<2x64xf32>
    %653 = vector.extract_strided_slice %644 {offsets = [0, 64], sizes = [2, 64], strides = [1, 1]} : vector<2x192xf32> to vector<2x64xf32>
    %654 = vector.extract_strided_slice %641 {offsets = [0, 64], sizes = [2, 64], strides = [1, 1]} : vector<2x192xf32> to vector<2x64xf32>
    %655 = arith.addf %653, %654 : vector<2x64xf32>
    %656 = arith.negf %655 : vector<2x64xf32>
    %657 = math.exp %656 : vector<2x64xf32>
    %cst_161 = arith.constant 1.000000e+00 : f32
    %658 = vector.broadcast %cst_161 : f32 to vector<2x64xf32>
    %659 = arith.addf %658, %657 : vector<2x64xf32>
    %660 = arith.divf %658, %659 : vector<2x64xf32>
    %661 = vector.extract_strided_slice %644 {offsets = [0, 128], sizes = [2, 64], strides = [1, 1]} : vector<2x192xf32> to vector<2x64xf32>
    %662 = vector.extract_strided_slice %641 {offsets = [0, 128], sizes = [2, 64], strides = [1, 1]} : vector<2x192xf32> to vector<2x64xf32>
    %663 = arith.mulf %652, %662 : vector<2x64xf32>
    %664 = arith.addf %661, %663 : vector<2x64xf32>
    %665 = math.tanh %664 : vector<2x64xf32>
    %cst_162 = arith.constant 1.000000e+00 : f32
    %666 = vector.broadcast %cst_162 : f32 to vector<2x64xf32>
    %667 = arith.subf %666, %660 : vector<2x64xf32>
    %668 = arith.mulf %667, %665 : vector<2x64xf32>
    %669 = arith.mulf %660, %621 : vector<2x64xf32>
    %670 = arith.addf %668, %669 : vector<2x64xf32>
    %c8_i32_163 = arith.constant 8 : i32
    %c0_164 = arith.constant 0 : index
    %c0_165 = arith.constant 0 : index
    %671 = vector.load %arg5[%c0_164, %c0_165] : memref<64x2xf32, #tpu.memory_space<vmem>>, vector<64x2xf32>
    %cst_166 = arith.constant dense<0.000000e+00> : vector<2x2xf32>
    %672 = tpu.matmul %670, %671, %cst_166 {dimension_numbers = #tpu.dot_dimension_numbers<[1], [0], [0], [1], [0, 0, 1, 1], [], []>} : vector<2x64xf32>, vector<64x2xf32>, vector<2x2xf32> -> vector<2x2xf32>
    %c0_167 = arith.constant 0 : index
    %c0_168 = arith.constant 0 : index
    %673 = vector.load %arg6[%c0_167, %c0_168] : memref<1x2xf32, #tpu.memory_space<vmem>>, vector<1x2xf32>
    %674 = vector.broadcast %673 : vector<1x2xf32> to vector<2x2xf32>
    %675 = arith.addf %672, %674 : vector<2x2xf32>
    %c0_169 = arith.constant 0 : index
    %c0_170 = arith.constant 0 : index
    %676 = vector.load %arg7[%c0_169, %c0_170] : memref<2x2xf32, #tpu.memory_space<vmem>>, vector<2x2xf32>
    tpu.vector_store %arg7[%c0_169, %c0_170], %675 {strides = array<i32>} : memref<2x2xf32, #tpu.memory_space<vmem>>, vector<2x2xf32>,
    return
  }
}

</mosaic_0001>

<bundles_post_ra>
// kernel: tpu_custom_call.1
= control target key start
LH: loop header
LB: loop body
LE: loop exit
PB: predicated region body
PF: predicated region fallthrough
CT: control target
= control target key end

     0   :  { %v2667_v7 = vmov 0.0   ;;  %s3228_s0 = inlined_call_operand.vmem [shape: f32[16,100], index: 0, kind: input, shape index: {}]   ;;  %s3229_s1 = inlined_call_operand.vmem [shape: f32[100,192], index: 1, kind: input, shape index: {}]   ;;  %s3230_s2 = inlined_call_operand.vmem [shape: f32[1,192], index: 2, kind: input, shape index: {}]   ;;  %s3231_s3 = inlined_call_operand.vmem [shape: f32[64,192], index: 3, kind: input, shape index: {}]   ;;  %s3232_s4 = inlined_call_operand.vmem [shape: f32[1,192], index: 4, kind: input, shape index: {}]   ;;  %s3233_s5 = inlined_call_operand.vmem [shape: f32[64,2], index: 5, kind: input, shape index: {}]   ;;  %s3234_s6 = inlined_call_operand.vmem [shape: f32[1,2], index: 6, kind: input, shape index: {}]   ;;  %s3235_s7 = inlined_call_operand.hbm [shape: f32[2,2], index: 7, kind: output, shape index: {}]  }
   0x1   :  { %v30_v0 = vld [vmem:[%s3229_s1 + $0x8] sm:$0xff]  ;;  %v32_v1 = vld [vmem:[%s3229_s1 + $0x18] sm:$0xff]  ;;  %v29_v2 = vld [vmem:[%s3229_s1] sm:$0xff]  ;;  %145 = vmatprep.mubr.f32.mxu0 %v2667_v7  ;;  %302 = vmatprep.mubr.f32.mxu1 %v2667_v7 }
   0x2   :  { %v2229_v3 = vpack.c.bf16 %v32_v1, %v30_v0  ;;  %v31_v4 = vld [vmem:[%s3229_s1 + $0x10] sm:$0xff]  ;;  %v34_v5 = vld [vmem:[%s3229_s1 + $0x28] sm:$0xff]  ;;  %v36_v6 = vld [vmem:[%s3229_s1 + $0x38] sm:$0xff] }
   0x3   :  { %v2231_v8 = vpack.c.bf16 %v31_v4, %v29_v2  ;;  %v2233_v9 = vpack.c.bf16 %v36_v6, %v34_v5  ;;  %v33_v10 = vld [vmem:[%s3229_s1 + $0x20] sm:$0xff]  ;;  %v35_v11 = vld [vmem:[%s3229_s1 + $0x30] sm:$0xff]  ;;  %v38_v12 = vld [vmem:[%s3229_s1 + $0x48] sm:$0xff] }
   0x4   :  { %2230 = vmatprep.subr.bf16.mxu0 %v2229_v3  ;;  %v40_v13 = vld [vmem:[%s3229_s1 + $0x58] sm:$0xff]  ;;  %v2235_v14 = vpack.c.bf16 %v35_v11, %v33_v10  ;;  %v37_v16 = vld [vmem:[%s3229_s1 + $0x40] sm:$0xff]  ;;  %v39_v17 = vld [vmem:[%s3229_s1 + $0x50] sm:$0xff] }
   0x5   :  { %2232 = vmatpush1.bf16.msra.mxu0 %v2231_v8  ;;  %v2237_v15 = vpack.c.bf16 %v40_v13, %v38_v12  ;;  %v42_v18 = vld [vmem:[%s3229_s1 + $0x68] sm:$0xff]  ;;  %v44_v19 = vld [vmem:[%s3229_s1 + $0x78] sm:$0xff]  ;;  %v207_v22 = vld [vmem:[%s3231_s3] sm:$0xff]  ;;  %v2239_v24 = vpack.c.bf16 %v39_v17, %v37_v16 }
   0x6   :  { %2234 = vmatprep.subr.bf16.mxu0 %v2233_v9  ;;  %v208_v20 = vld [vmem:[%s3231_s3 + $0x8] sm:$0xff]  ;;  %v210_v21 = vld [vmem:[%s3231_s3 + $0x18] sm:$0xff]  ;;  %v209_v23 = vld [vmem:[%s3231_s3 + $0x10] sm:$0xff]  ;;  %v2241_v29 = vpack.c.bf16 %v44_v19, %v42_v18 }
   0x7   :  { %v41_v25 = vld [vmem:[%s3229_s1 + $0x60] sm:$0xff]  ;;  %v43_v26 = vld [vmem:[%s3229_s1 + $0x70] sm:$0xff]  ;;  %v2774_v27 = vpack.c.bf16 %v210_v21, %v208_v20  ;;  %v2776_v28 = vpack.c.bf16 %v209_v23, %v207_v22  ;;  %v46_v30 = vld [vmem:[%s3229_s1 + $0x88] sm:$0xff] }
   0x8   :  { %v212_v31 = vld [vmem:[%s3231_s3 + $0x28] sm:$0xff]  ;;  %v214_v32 = vld [vmem:[%s3231_s3 + $0x38] sm:$0xff]  ;;  %v211_v35 = vld [vmem:[%s3231_s3 + $0x20] sm:$0xff]  ;;  %v2243_v40 = vpack.c.bf16 %v43_v26, %v41_v25 }
   0x9   :  { %2236 = vmatpush1.bf16.msra.mxu0 %v2235_v14  ;;  %v48_v33 = vld [vmem:[%s3229_s1 + $0x98] sm:$0xff]  ;;  %2254 = vmatprep.subr.bf16.mxu1 %v2774_v27  ;;  %v2791_v34 = vpack.c.bf16 %v214_v32, %v212_v31  ;;  %v213_v36 = vld [vmem:[%s3231_s3 + $0x30] sm:$0xff]  ;;  %v216_v38 = vld [vmem:[%s3231_s3 + $0x48] sm:$0xff] }
   0xa   :  { %2238 = vmatprep.subr.bf16.mxu0 %v2237_v15  ;;  %2256 = vmatpush1.bf16.msra.mxu1 %v2776_v28  ;;  %v2800_v37 = vpack.c.bf16 %v213_v36, %v211_v35  ;;  %v218_v39 = vld [vmem:[%s3231_s3 + $0x58] sm:$0xff]  ;;  %v45_v41 = vld [vmem:[%s3229_s1 + $0x80] sm:$0xff]  ;;  %v217_v44 = vld [vmem:[%s3231_s3 + $0x50] sm:$0xff]  ;;  %v2245_v45 = vpack.c.bf16 %v48_v33, %v46_v30 }
   0xb   :  { %2258 = vmatprep.subr.bf16.mxu1 %v2791_v34  ;;  %v2812_v42 = vpack.c.bf16 %v218_v39, %v216_v38  ;;  %v215_v43 = vld [vmem:[%s3231_s3 + $0x40] sm:$0xff]  ;;  %v47_v46 = vld [vmem:[%s3229_s1 + $0x90] sm:$0xff]  ;;  %v220_v47 = vld [vmem:[%s3231_s3 + $0x68] sm:$0xff] }
   0xc   :  { %v222_v48 = vld [vmem:[%s3231_s3 + $0x78] sm:$0xff]  ;;  %v50_v49 = vld [vmem:[%s3229_s1 + $0xa8] sm:$0xff] }
   0xd   :  { %2240 = vmatpush1.bf16.msra.mxu0 %v2239_v24  ;;  %v52_v50 = vld [vmem:[%s3229_s1 + $0xb8] sm:$0xff] }
   0xe   :  { %2242 = vmatprep.subr.bf16.mxu0 %v2241_v29 }
   0xf   :  { %12 = vsyncpa [#allocation5], 0  ;;  %2260 = vmatpush1.bf16.msra.mxu1 %v2800_v37  ;;  %v2836_v51 = vpack.c.bf16 %v217_v44, %v215_v43  ;;  %v2247_v52 = vpack.c.bf16 %v47_v46, %v45_v41  ;;  %v2839_v53 = vpack.c.bf16 %v222_v48, %v220_v47  ;;  %v219_v54 = vld [vmem:[%s3231_s3 + $0x60] sm:$0xff]  ;;  %v221_v55 = vld [vmem:[%s3231_s3 + $0x70] sm:$0xff]  ;;  %v2249_v56 = vpack.c.bf16 %v52_v50, %v50_v49  ;;  %s2671_s14 = smov [#allocation4]  }
  0x10   :  { %2262 = vmatprep.subr.bf16.mxu1 %v2812_v42  ;;  %v49_v57 = vld [vmem:[%s3229_s1 + $0xa0] sm:$0xff]  ;;  %v51_v58 = vld [vmem:[%s3229_s1 + $0xb0] sm:$0xff]  ;;  %v2854_v59 = vpack.c.bf16 %v221_v55, %v219_v54  ;;  %v54_v61 = vld [vmem:[%s3229_s1 + $0xc8] sm:$0xf]  ;;  %vm74_vm0 = vcmask 1043456   ;;  %vm67_vm1 = vcmask 818176   ;;  %v57_v0 = vlaneseq }
  0x11   :  { %2244 = vmatpush1.bf16.msra.mxu0 %v2243_v40  ;;  %v2251_v60 = vpack.c.bf16 %v51_v58, %v49_v57  ;;  %v53_v62 = vld [vmem:[%s3229_s1 + $0xc0] sm:$0xf]  ;;  %vm159_vm2 = vcmask 523264   ;;  %vm1132_vm3 = vcmask 1041408   ;;  %vm1134_vm4 = vcmask 517120  }
  0x12   :  { %2246 = vmatprep.subr.bf16.mxu0 %v2245_v45  ;;  %v27_v63 = vld [vmem:[%s3228_s0] sm:$0xff]  ;;  %v58_v1 = vshrl.u32 %v57_v0, 7  ;;  %vm2670_vm5 = vmmov 0   ;;  %vm2148_vm6 = vcmask 9216  }
  0x13   :  { %2264 = vmatpush1.bf16.msra.mxu1 %v2836_v51  ;;  %v55_v3 = vld [vmem:[%s3230_s2] sm:$0x3]  ;;  %s2668_s2 = smov 64  }
  0x14   :  { %2266 = vmatprep.subr.bf16.mxu1 %v2839_v53  ;;  %v59_v2 = vsub.s32 0, %v58_v1  ;;  %v63_v4 = vsub.s32 1, %v58_v1  ;;  %v223_v11 = vld [vmem:[%s3232_s4] sm:$0x3] }
  0x15   :  { %2248 = vmatpush1.bf16.msra.mxu0 %v2247_v52 }
  0x16   :  { %2250 = vmatprep.subr.bf16.mxu0 %v2249_v56  ;;  %v2892_v5 = vrot.slane %v55_v3, %v59_v2  ;;  %v2894_v8 = vrot.slane %v55_v3, %v63_v4  ;;  %v2906_v15 = vrot.slane %v223_v11, %v59_v2  ;;  %v2911_v22 = vrot.slane %v223_v11, %v63_v4 }
  0x17   :  { %2268 = vmatpush1.bf16.msra.mxu1 %v2854_v59 }
  0x18   :  { %2270 = vmatprep.subr.bf16.mxu1 %v2774_v27 }
  0x19   :  { %2252 = vmatpush1.bf16.msra.mxu0 %v2251_v60  ;;  %v28_v60 = vld [vmem:[%s3228_s0 + $0x8] sm:$0xff] }
  0x1a   :  { %2164 = vmatprep.subr.msk.mxu0 %vm74_vm0, %v54_v61  ;;  %303 = vmatmul.mubr.f32.vlgmr.msra.gmra.mrb[0].mxu1 %v2667_v7 }
  0x1b   :  { %2272 = vmatpush1.bf16.msra.mxu1 %v2776_v28  ;;  %398 = vmatprep.mubr.f32.mxu1 %v2667_v7 }
  0x1c   :  { %2274 = vmatprep.subr.bf16.mxu1 %v2791_v34 }
  0x1d   :  { %2165 = vmatpush1.msk.msra.mxu0 %vm74_vm0, %v53_v62 }
  0x1e   :  { %2166 = vmatmul.mubr.msk.f32.vlgmr.msra.gmra.mrb[0].mxu0 %vm67_vm1, %v27_v63  ;;  %2286 = vmatprep.subr.bf16.mxu0 %v2774_v27 }
  0x1f   :  { %2288 = vmatpush1.bf16.msra.mxu0 %v2776_v28  ;;  %151 = vmatprep.mubr.f32.mxu0 %v2667_v7 }
  0x20   :  { %2276 = vmatpush1.bf16.msra.mxu1 %v2800_v37  ;;  %2290 = vmatprep.subr.bf16.mxu0 %v2791_v34 }
  0x21   :  { %2278 = vmatprep.subr.bf16.mxu1 %v2812_v42 }
  0x22   :  { %2167 = vmatmul.mubr.msk.f32.gmra.mrb[2].mxu0 %vm67_vm1, %v28_v60 }
  0x23   :  { %2292 = vmatpush1.bf16.msra.mxu0 %v2800_v37  ;;  %503 = vmatprep.mubr.f32.mxu0 %v2667_v7 }
  0x24   :  { %2280 = vmatpush1.bf16.msra.mxu1 %v2836_v51  ;;  %2294 = vmatprep.subr.bf16.mxu0 %v2812_v42 }
  0x25   :  { %2282 = vmatprep.subr.bf16.mxu1 %v2839_v53 }
  0x27   :  { %2296 = vmatpush1.bf16.msra.mxu0 %v2836_v51 }
  0x28   :  { %2284 = vmatpush1.bf16.msra.mxu1 %v2854_v59  ;;  %2298 = vmatprep.subr.bf16.mxu0 %v2839_v53 }
  0x29   :  { %2302 = vmatprep.subr.bf16.mxu1 %v2774_v27 }
  0x2b   :  { %2300 = vmatpush1.bf16.msra.mxu0 %v2854_v59 }
  0x2c   :  { %2318 = vmatprep.subr.bf16.mxu0 %v2774_v27 }
  0xed   :  { %v304_v6 = vpop.f32.mrb[0].mxu1 }
  0xee   :  { %v306_v9 = vpop.f32.mrb[1].mxu1  ;;  %v305_v16 = vadd.f32 %v304_v6, %v2906_v15 }
  0xef   :  { %v307_v23 = vadd.f32 %v306_v9, %v2911_v22 }
  0xf1   :  { %v147_v10 = vpop.f32.mrb[0].mxu0 }
  0xf2   :  { %v2900_v12 = vadd.f32 %v147_v10, %v2892_v5  ;;  %v149_v13 = vpop.f32.mrb[1].mxu0 }
  0xf3   :  { %v2903_v14 = vadd.f32 %v149_v13, %v2894_v8 }
  0xf4   :  { %158 = vst [vmem:[#allocation2] sm:$0xff] %v2900_v12 }
  0xf5   :  { %160 = vst.msk [vmem:[#allocation2 + $0x8] sm:$0xff] %vm159_vm2, %v2903_v14  ;;  %v153_v3 = vpop.f32.mrb[2].mxu0 }
  0xf6   :  { %v2936_v4 = vadd.f32 %v153_v3, %v2892_v5  ;;  %v155_v6 = vpop.f32.mrb[3].mxu0 }
  0xf7   :  { %v2939_v9 = vadd.f32 %v155_v6, %v2894_v8 }
  0xf8   :  { %161 = vst [vmem:[#allocation2 + $0x10] sm:$0xff] %v2936_v4 }
  0xf9   :  { %162 = vst.msk [vmem:[#allocation2 + $0x18] sm:$0xff] %vm159_vm2, %v2939_v9 }
  0xfb   :  { %v309_v17 = vld [vmem:[#allocation2] sm:$0x3]  ;;  %v405_v44 = vld [vmem:[#allocation2] sm:$0xc] }
  0xfc   :  { %v311_v18 = vadd.f32 %v309_v17, %v305_v16  ;;  %v310_v26 = vld [vmem:[#allocation2 + $0x8] sm:$0x3]  ;;  %v406_v57 = vld [vmem:[#allocation2 + $0x8] sm:$0xc]  ;;  %v510_v16 = vld [vmem:[#allocation2] sm:$0x30] }
  0xfd   :  { %v616_v60 = vld [vmem:[#allocation2 + $0x8] sm:$0xc0] }
  0xfe   :  { %v2168_v19 = vmul.f32 -1.442695, %v311_v18 }
 0x100   :  { %2526 = vpow2.f32 %v2168_v19 }
 0x10a   :  { %v2527_v20 = vpop.eup %2526 }
 0x10b   :  { %v315_v21 = vadd.f32 1.0, %v2527_v20 }
 0x10d   :  { %2528 = vrcp.f32 %v315_v21 }
 0x117   :  { %v2529_v24 = vpop.eup %2528 }
 0x118   :  { %v318_v25 = vmul.f32 %v2529_v24, %v307_v23  ;;  %v321_v31 = vsub.f32 1.0, %v2529_v24  ;;  %v327_v33 = vmul.f32 0.0, %v2529_v24 }
 0x11a   :  { %v319_v29 = vadd.f32 %v318_v25, %v310_v26 }
 0x11c   :  { %2530 = vtanh.f32 %v319_v29 }
 0x126   :  { %v2531_v30 = vpop.eup %2530 }
 0x127   :  { %323 = vrot.lane.b32.xlu0 %v2531_v30, %s2668_s2  ;;  %v511_v30 = vld [vmem:[#allocation2 + $0x8] sm:$0x30] }
 0x199   :  { %v324_v32 = vpop.permute.xlu0 %323 }
 0x19a   :  { %v326_v35 = vmul.f32 %v324_v32, %v321_v31 }
 0x19c   :  { %v328_v36 = vadd.f32 %v327_v33, %v326_v35 }
 0x19e   :  { %330 = vrot.lane.b32.xlu0 %v328_v36, %s2668_s2  ;;  %v429_v50 = vrot.slane %v328_v36, 6 }
 0x210   :  { %v331_v38 = vpop.permute.xlu0 %330 }
 0x211   :  { %2169 = vmatmul.mubr.msk.f32.vlgmr.msra.gmra.mrb[2].mxu1 %vm159_vm2, %v331_v38 }
 0x212   :  { %2304 = vmatpush1.bf16.msra.mxu1 %v2776_v28  ;;  %608 = vmatprep.mubr.f32.mxu1 %v2667_v7 }
 0x213   :  { %2306 = vmatprep.subr.bf16.mxu1 %v2791_v34 }
 0x216   :  { %2308 = vmatpush1.bf16.msra.mxu1 %v2800_v37 }
 0x217   :  { %2310 = vmatprep.subr.bf16.mxu1 %v2812_v42 }
 0x21a   :  { %2312 = vmatpush1.bf16.msra.mxu1 %v2836_v51 }
 0x21b   :  { %2314 = vmatprep.subr.bf16.mxu1 %v2839_v53 }
 0x21e   :  { %2316 = vmatpush1.bf16.msra.mxu1 %v2854_v59 }
 0x21f   :  { %2334 = vmatprep.subr.bf16.mxu1 %v2774_v27 }
 0x2e4   :  { %v400_v39 = vpop.f32.mrb[2].mxu1 }
 0x2e5   :  { %v401_v40 = vadd.f32 %v400_v39, %v2906_v15  ;;  %v402_v41 = vpop.f32.mrb[3].mxu1 }
 0x2e6   :  { %v403_v49 = vadd.f32 %v402_v41, %v2911_v22 }
 0x2e7   :  { %v408_v43 = vrot.slane %v401_v40, 6 }
 0x2e8   :  { %v418_v52 = vrot.slane %v403_v49, 6 }
 0x2e9   :  { %v410_v45 = vadd.f32 %v408_v43, %v405_v44 }
 0x2eb   :  { %v2170_v46 = vmul.f32 -1.442695, %v410_v45 }
 0x2ed   :  { %2532 = vpow2.f32 %v2170_v46  ;;  %v615_v46 = vld [vmem:[#allocation2] sm:$0xc0] }
 0x2f7   :  { %v2533_v47 = vpop.eup %2532 }
 0x2f8   :  { %v414_v48 = vadd.f32 1.0, %v2533_v47 }
 0x2fa   :  { %2534 = vrcp.f32 %v414_v48 }
 0x304   :  { %v2535_v54 = vpop.eup %2534 }
 0x305   :  { %v420_v55 = vmul.f32 %v2535_v54, %v418_v52  ;;  %v431_v56 = vmul.f32 %v2535_v54, %v429_v50  ;;  %v423_v62 = vsub.f32 1.0, %v2535_v54 }
 0x307   :  { %v421_v58 = vadd.f32 %v420_v55, %v406_v57 }
 0x309   :  { %2536 = vtanh.f32 %v421_v58 }
 0x313   :  { %v2537_v61 = vpop.eup %2536 }
 0x314   :  { %425 = vrot.lane.b32.xlu1 %v2537_v61, %s2668_s2 }
 0x386   :  { %v426_v63 = vpop.permute.xlu1 %425 }
 0x387   :  { %v428_v0 = vmul.f32 %v426_v63, %v423_v62 }
 0x389   :  { %v432_v1 = vadd.f32 %v431_v56, %v428_v0 }
 0x38b   :  { %v434_v2 = vrot.slane %v432_v1, 2  ;;  %v534_v23 = vrot.slane %v432_v1, 6 }
 0x38d   :  { %435 = vrot.lane.b32.xlu1 %v434_v2, %s2668_s2 }
 0x3ff   :  { %v436_v10 = vpop.permute.xlu1 %435 }
 0x400   :  { %2171 = vmatmul.mubr.msk.f32.vlgmr.msra.gmra.mrb[4].mxu0 %vm159_vm2, %v436_v10 }
 0x401   :  { %2320 = vmatpush1.bf16.msra.mxu0 %v2776_v28  ;;  %713 = vmatprep.mubr.f32.mxu0 %v2667_v7 }
 0x402   :  { %2322 = vmatprep.subr.bf16.mxu0 %v2791_v34 }
 0x405   :  { %2324 = vmatpush1.bf16.msra.mxu0 %v2800_v37 }
 0x406   :  { %2326 = vmatprep.subr.bf16.mxu0 %v2812_v42 }
 0x409   :  { %2328 = vmatpush1.bf16.msra.mxu0 %v2836_v51 }
 0x40a   :  { %2330 = vmatprep.subr.bf16.mxu0 %v2839_v53 }
 0x40d   :  { %2332 = vmatpush1.bf16.msra.mxu0 %v2854_v59 }
 0x40e   :  { %2350 = vmatprep.subr.bf16.mxu0 %v2774_v27 }
 0x4d3   :  { %v505_v5 = vpop.f32.mrb[4].mxu0 }
 0x4d4   :  { %v506_v8 = vadd.f32 %v505_v5, %v2906_v15  ;;  %v507_v11 = vpop.f32.mrb[5].mxu0 }
 0x4d5   :  { %v508_v21 = vadd.f32 %v507_v11, %v2911_v22  ;;  %v720_v11 = vld [vmem:[#allocation2 + $0x10] sm:$0x3] }
 0x4d6   :  { %v513_v13 = vrot.slane %v506_v8, 4 }
 0x4d7   :  { %v523_v24 = vrot.slane %v508_v21, 4 }
 0x4d8   :  { %v515_v17 = vadd.f32 %v513_v13, %v510_v16 }
 0x4da   :  { %v2172_v18 = vmul.f32 -1.442695, %v515_v17 }
 0x4dc   :  { %2538 = vpow2.f32 %v2172_v18 }
 0x4e6   :  { %v2539_v19 = vpop.eup %2538 }
 0x4e7   :  { %v519_v20 = vadd.f32 1.0, %v2539_v19 }
 0x4e9   :  { %2540 = vrcp.f32 %v519_v20 }
 0x4f3   :  { %v2541_v25 = vpop.eup %2540 }
 0x4f4   :  { %v525_v26 = vmul.f32 %v2541_v25, %v523_v24  ;;  %v536_v29 = vmul.f32 %v2541_v25, %v534_v23  ;;  %v528_v33 = vsub.f32 1.0, %v2541_v25  ;;  %v721_v23 = vld [vmem:[#allocation2 + $0x18] sm:$0x3] }
 0x4f6   :  { %v526_v31 = vadd.f32 %v525_v26, %v511_v30 }
 0x4f8   :  { %2542 = vtanh.f32 %v526_v31 }
 0x502   :  { %v2543_v32 = vpop.eup %2542 }
 0x503   :  { %530 = vrot.lane.b32.xlu0 %v2543_v32, %s2668_s2 }
 0x575   :  { %v531_v35 = vpop.permute.xlu0 %530 }
 0x576   :  { %v533_v36 = vmul.f32 %v531_v35, %v528_v33 }
 0x578   :  { %v537_v38 = vadd.f32 %v536_v29, %v533_v36 }
 0x57a   :  { %v539_v39 = vrot.slane %v537_v38, 4  ;;  %v639_v54 = vrot.slane %v537_v38, 6 }
 0x57c   :  { %540 = vrot.lane.b32.xlu1 %v539_v39, %s2668_s2 }
 0x5ee   :  { %v541_v40 = vpop.permute.xlu1 %540 }
 0x5ef   :  { %2173 = vmatmul.mubr.msk.f32.vlgmr.msra.gmra.mrb[4].mxu1 %vm159_vm2, %v541_v40  ;;  %v817_v40 = vld [vmem:[#allocation2 + $0x10] sm:$0xc] }
 0x5f0   :  { %2336 = vmatpush1.bf16.msra.mxu1 %v2776_v28  ;;  %810 = vmatprep.mubr.f32.mxu1 %v2667_v7 }
 0x5f1   :  { %2338 = vmatprep.subr.bf16.mxu1 %v2791_v34 }
 0x5f4   :  { %2340 = vmatpush1.bf16.msra.mxu1 %v2800_v37 }
 0x5f5   :  { %2342 = vmatprep.subr.bf16.mxu1 %v2812_v42 }
 0x5f8   :  { %2344 = vmatpush1.bf16.msra.mxu1 %v2836_v51 }
 0x5f9   :  { %2346 = vmatprep.subr.bf16.mxu1 %v2839_v53 }
 0x5fc   :  { %2348 = vmatpush1.bf16.msra.mxu1 %v2854_v59 }
 0x5fd   :  { %2366 = vmatprep.subr.bf16.mxu1 %v2774_v27 }
 0x6c2   :  { %v610_v41 = vpop.f32.mrb[4].mxu1 }
 0x6c3   :  { %v611_v43 = vadd.f32 %v610_v41, %v2906_v15  ;;  %v612_v44 = vpop.f32.mrb[5].mxu1 }
 0x6c4   :  { %v613_v52 = vadd.f32 %v612_v44, %v2911_v22 }
 0x6c5   :  { %v618_v45 = vrot.slane %v611_v43, 2 }
 0x6c6   :  { %v628_v55 = vrot.slane %v613_v52, 2 }
 0x6c7   :  { %v620_v47 = vadd.f32 %v618_v45, %v615_v46 }
 0x6c9   :  { %v2174_v48 = vmul.f32 -1.442695, %v620_v47 }
 0x6cb   :  { %2544 = vpow2.f32 %v2174_v48 }
 0x6d5   :  { %v2545_v49 = vpop.eup %2544 }
 0x6d6   :  { %v624_v50 = vadd.f32 1.0, %v2545_v49 }
 0x6d8   :  { %2546 = vrcp.f32 %v624_v50 }
 0x6e2   :  { %v2547_v56 = vpop.eup %2546 }
 0x6e3   :  { %v630_v57 = vmul.f32 %v2547_v56, %v628_v55  ;;  %v641_v58 = vmul.f32 %v2547_v56, %v639_v54  ;;  %v633_v63 = vsub.f32 1.0, %v2547_v56  ;;  %v818_v54 = vld [vmem:[#allocation2 + $0x18] sm:$0xc] }
 0x6e5   :  { %v631_v61 = vadd.f32 %v630_v57, %v616_v60 }
 0x6e7   :  { %2548 = vtanh.f32 %v631_v61 }
 0x6f1   :  { %v2549_v62 = vpop.eup %2548 }
 0x6f2   :  { %635 = vrot.lane.b32.xlu0 %v2549_v62, %s2668_s2 }
 0x764   :  { %v636_v0 = vpop.permute.xlu0 %635 }
 0x765   :  { %v638_v1 = vmul.f32 %v636_v0, %v633_v63 }
 0x767   :  { %v642_v2 = vadd.f32 %v641_v58, %v638_v1 }
 0x769   :  { %v644_v3 = vrot.slane %v642_v2, 6 }
 0x76b   :  { %645 = vrot.lane.b32.xlu1 %v644_v3, %s2668_s2 }
 0x7dd   :  { %v646_v6 = vpop.permute.xlu1 %645 }
 0x7de   :  { %2175 = vmatmul.mubr.msk.f32.vlgmr.msra.gmra.mrb[6].mxu0 %vm159_vm2, %v646_v6  ;;  %v922_v6 = vld [vmem:[#allocation2 + $0x10] sm:$0x30] }
 0x7df   :  { %2352 = vmatpush1.bf16.msra.mxu0 %v2776_v28  ;;  %915 = vmatprep.mubr.f32.mxu0 %v2667_v7 }
 0x7e0   :  { %2354 = vmatprep.subr.bf16.mxu0 %v2791_v34 }
 0x7e3   :  { %2356 = vmatpush1.bf16.msra.mxu0 %v2800_v37 }
 0x7e4   :  { %2358 = vmatprep.subr.bf16.mxu0 %v2812_v42 }
 0x7e7   :  { %2360 = vmatpush1.bf16.msra.mxu0 %v2836_v51 }
 0x7e8   :  { %2362 = vmatprep.subr.bf16.mxu0 %v2839_v53 }
 0x7eb   :  { %2364 = vmatpush1.bf16.msra.mxu0 %v2854_v59 }
 0x7ec   :  { %2382 = vmatprep.subr.bf16.mxu0 %v2774_v27 }
 0x8b1   :  { %v715_v10 = vpop.f32.mrb[6].mxu0 }
 0x8b2   :  { %v716_v5 = vadd.f32 %v715_v10, %v2906_v15  ;;  %v717_v8 = vpop.f32.mrb[7].mxu0 }
 0x8b3   :  { %v718_v19 = vadd.f32 %v717_v8, %v2911_v22 }
 0x8b4   :  { %v722_v13 = vadd.f32 %v720_v11, %v716_v5 }
 0x8b6   :  { %v2176_v16 = vmul.f32 -1.442695, %v722_v13 }
 0x8b8   :  { %2550 = vpow2.f32 %v2176_v16 }
 0x8c2   :  { %v2551_v17 = vpop.eup %2550 }
 0x8c3   :  { %v726_v18 = vadd.f32 1.0, %v2551_v17 }
 0x8c5   :  { %2552 = vrcp.f32 %v726_v18 }
 0x8cf   :  { %v2553_v20 = vpop.eup %2552 }
 0x8d0   :  { %v729_v21 = vmul.f32 %v2553_v20, %v718_v19  ;;  %v732_v26 = vsub.f32 1.0, %v2553_v20  ;;  %v739_v30 = vmul.f32 %v2553_v20, %v644_v3 }
 0x8d2   :  { %v730_v24 = vadd.f32 %v729_v21, %v721_v23  ;;  %v923_v21 = vld [vmem:[#allocation2 + $0x18] sm:$0x30] }
 0x8d4   :  { %2554 = vtanh.f32 %v730_v24 }
 0x8de   :  { %v2555_v25 = vpop.eup %2554 }
 0x8df   :  { %734 = vrot.lane.b32.xlu0 %v2555_v25, %s2668_s2 }
 0x951   :  { %v735_v29 = vpop.permute.xlu0 %734 }
 0x952   :  { %v737_v31 = vmul.f32 %v735_v29, %v732_v26 }
 0x954   :  { %v740_v32 = vadd.f32 %v739_v30, %v737_v31 }
 0x956   :  { %742 = vrot.lane.b32.xlu1 %v740_v32, %s2668_s2  ;;  %v841_v47 = vrot.slane %v740_v32, 6 }
 0x9c8   :  { %v743_v33 = vpop.permute.xlu1 %742 }
 0x9c9   :  { %2177 = vmatmul.mubr.msk.f32.vlgmr.msra.gmra.mrb[6].mxu1 %vm159_vm2, %v743_v33 }
 0x9ca   :  { %2368 = vmatpush1.bf16.msra.mxu1 %v2776_v28  ;;  %1020 = vmatprep.mubr.f32.mxu1 %v2667_v7 }
 0x9cb   :  { %2370 = vmatprep.subr.bf16.mxu1 %v2791_v34 }
 0x9ce   :  { %2372 = vmatpush1.bf16.msra.mxu1 %v2800_v37 }
 0x9cf   :  { %2374 = vmatprep.subr.bf16.mxu1 %v2812_v42 }
 0x9d2   :  { %2376 = vmatpush1.bf16.msra.mxu1 %v2836_v51 }
 0x9d3   :  { %2378 = vmatprep.subr.bf16.mxu1 %v2839_v53 }
 0x9d6   :  { %2380 = vmatpush1.bf16.msra.mxu1 %v2854_v59 }
 0x9d7   :  { %2398 = vmatprep.subr.bf16.mxu1 %v2774_v27 }
 0xa9c   :  { %v812_v35 = vpop.f32.mrb[6].mxu1 }
 0xa9d   :  { %v813_v36 = vadd.f32 %v812_v35, %v2906_v15  ;;  %v814_v38 = vpop.f32.mrb[7].mxu1 }
 0xa9e   :  { %v815_v46 = vadd.f32 %v814_v38, %v2911_v22 }
 0xa9f   :  { %v820_v39 = vrot.slane %v813_v36, 6 }
 0xaa0   :  { %v830_v48 = vrot.slane %v815_v46, 6 }
 0xaa1   :  { %v822_v41 = vadd.f32 %v820_v39, %v817_v40  ;;  %v1027_v39 = vld [vmem:[#allocation2 + $0x10] sm:$0xc0] }
 0xaa3   :  { %v2178_v43 = vmul.f32 -1.442695, %v822_v41 }
 0xaa5   :  { %2556 = vpow2.f32 %v2178_v43 }
 0xaaf   :  { %v2557_v44 = vpop.eup %2556 }
 0xab0   :  { %v826_v45 = vadd.f32 1.0, %v2557_v44 }
 0xab2   :  { %2558 = vrcp.f32 %v826_v45 }
 0xabc   :  { %v2559_v49 = vpop.eup %2558 }
 0xabd   :  { %v832_v50 = vmul.f32 %v2559_v49, %v830_v48  ;;  %v843_v52 = vmul.f32 %v2559_v49, %v841_v47  ;;  %v835_v57 = vsub.f32 1.0, %v2559_v49 }
 0xabf   :  { %v833_v55 = vadd.f32 %v832_v50, %v818_v54 }
 0xac1   :  { %2560 = vtanh.f32 %v833_v55 }
 0xacb   :  { %v2561_v56 = vpop.eup %2560 }
 0xacc   :  { %837 = vrot.lane.b32.xlu0 %v2561_v56, %s2668_s2  ;;  %v163_v56 = vsel %vm159_vm2, %v2903_v14, 0.0 }
 0xb3e   :  { %v838_v58 = vpop.permute.xlu0 %837 }
 0xb3f   :  { %v840_v60 = vmul.f32 %v838_v58, %v835_v57  ;;  %v164_v57 = vadd.f32 %v163_v56, %v2900_v12 }
 0xb41   :  { %v844_v61 = vadd.f32 %v843_v52, %v840_v60  ;;  %v1028_v52 = vld [vmem:[#allocation2 + $0x18] sm:$0xc0] }
 0xb43   :  { %v846_v62 = vrot.slane %v844_v61, 2  ;;  %v946_v16 = vrot.slane %v844_v61, 6 }
 0xb45   :  { %847 = vrot.lane.b32.xlu1 %v846_v62, %s2668_s2 }
 0xbb7   :  { %v848_v63 = vpop.permute.xlu1 %847 }
 0xbb8   :  { %2179 = vmatmul.mubr.msk.f32.vlgmr.msra.gmra.mrb[8].mxu0 %vm159_vm2, %v848_v63 }
 0xbb9   :  { %2384 = vmatpush1.bf16.msra.mxu0 %v2776_v28  ;;  %1125 = vmatprep.mubr.f32.mxu0 %v2667_v7 }
 0xbba   :  { %2386 = vmatprep.subr.bf16.mxu0 %v2791_v34 }
 0xbbd   :  { %2388 = vmatpush1.bf16.msra.mxu0 %v2800_v37 }
 0xbbe   :  { %2390 = vmatprep.subr.bf16.mxu0 %v2812_v42 }
 0xbc1   :  { %2392 = vmatpush1.bf16.msra.mxu0 %v2836_v51 }
 0xbc2   :  { %2394 = vmatprep.subr.bf16.mxu0 %v2839_v53 }
 0xbc5   :  { %2396 = vmatpush1.bf16.msra.mxu0 %v2854_v59 }
 0xbc6   :  { %2414 = vmatprep.subr.bf16.mxu0 %v2774_v27 }
 0xc8b   :  { %v917_v0 = vpop.f32.mrb[8].mxu0 }
 0xc8c   :  { %v918_v1 = vadd.f32 %v917_v0, %v2906_v15  ;;  %v919_v2 = vpop.f32.mrb[9].mxu0  ;;  %v172_v0 = vmul.f32 %v2903_v14, %v2903_v14 }
 0xc8d   :  { %v920_v13 = vadd.f32 %v919_v2, %v2911_v22  ;;  %v171_v2 = vmul.f32 %v2900_v12, %v2900_v12 }
 0xc8e   :  { %v925_v3 = vrot.slane %v918_v1, 4  ;;  %v175_v1 = vsel %vm159_vm2, %v172_v0, 0.0 }
 0xc8f   :  { %v935_v17 = vrot.slane %v920_v13, 4 }
 0xc90   :  { %v927_v10 = vadd.f32 %v925_v3, %v922_v6  ;;  %v176_v3 = vadd.f32 %v175_v1, %v171_v2 }
 0xc92   :  { %v2180_v5 = vmul.f32 -1.442695, %v927_v10 }
 0xc94   :  { %2562 = vpow2.f32 %v2180_v5 }
 0xc9e   :  { %v2563_v8 = vpop.eup %2562 }
 0xc9f   :  { %v931_v11 = vadd.f32 1.0, %v2563_v8 }
 0xca1   :  { %2564 = vrcp.f32 %v931_v11 }
 0xcab   :  { %v2565_v18 = vpop.eup %2564 }
 0xcac   :  { %v937_v19 = vmul.f32 %v2565_v18, %v935_v17  ;;  %v948_v20 = vmul.f32 %v2565_v18, %v946_v16  ;;  %v940_v25 = vsub.f32 1.0, %v2565_v18 }
 0xcae   :  { %v938_v23 = vadd.f32 %v937_v19, %v923_v21 }
 0xcb0   :  { %2566 = vtanh.f32 %v938_v23 }
 0xcba   :  { %v2567_v24 = vpop.eup %2566 }
 0xcbb   :  { %942 = vrot.lane.b32.xlu0 %v2567_v24, %s2668_s2 }
 0xd2d   :  { %v943_v26 = vpop.permute.xlu0 %942 }
 0xd2e   :  { %v945_v29 = vmul.f32 %v943_v26, %v940_v25 }
 0xd30   :  { %v949_v30 = vadd.f32 %v948_v20, %v945_v29 }
 0xd32   :  { %v951_v31 = vrot.slane %v949_v30, 4  ;;  %v1051_v46 = vrot.slane %v949_v30, 6 }
 0xd34   :  { %952 = vrot.lane.b32.xlu1 %v951_v31, %s2668_s2 }
 0xda6   :  { %v953_v32 = vpop.permute.xlu1 %952 }
 0xda7   :  { %2181 = vmatmul.mubr.msk.f32.vlgmr.msra.gmra.mrb[8].mxu1 %vm159_vm2, %v953_v32 }
 0xda8   :  { %2400 = vmatpush1.bf16.msra.mxu1 %v2776_v28  ;;  %1246 = vmatprep.mubr.f32.mxu1 %v2667_v7 }
 0xda9   :  { %2402 = vmatprep.subr.bf16.mxu1 %v2791_v34 }
 0xdac   :  { %2404 = vmatpush1.bf16.msra.mxu1 %v2800_v37 }
 0xdad   :  { %2406 = vmatprep.subr.bf16.mxu1 %v2812_v42 }
 0xdb0   :  { %2408 = vmatpush1.bf16.msra.mxu1 %v2836_v51 }
 0xdb1   :  { %2410 = vmatprep.subr.bf16.mxu1 %v2839_v53 }
 0xdb4   :  { %2412 = vmatpush1.bf16.msra.mxu1 %v2854_v59 }
 0xdb5   :  { %2430 = vmatprep.subr.bf16.mxu1 %v2774_v27 }
 0xe7a   :  { %v1022_v33 = vpop.f32.mrb[8].mxu1 }
 0xe7b   :  { %v1023_v35 = vadd.f32 %v1022_v33, %v2906_v15  ;;  %v1024_v36 = vpop.f32.mrb[9].mxu1 }
 0xe7c   :  { %v1025_v45 = vadd.f32 %v1024_v36, %v2911_v22 }
 0xe7d   :  { %v1030_v38 = vrot.slane %v1023_v35, 2 }
 0xe7e   :  { %v1040_v47 = vrot.slane %v1025_v45, 2 }
 0xe7f   :  { %v1032_v40 = vadd.f32 %v1030_v38, %v1027_v39 }
 0xe81   :  { %v2182_v41 = vmul.f32 -1.442695, %v1032_v40 }
 0xe83   :  { %2568 = vpow2.f32 %v2182_v41 }
 0xe8d   :  { %v2569_v43 = vpop.eup %2568 }
 0xe8e   :  { %v1036_v44 = vadd.f32 1.0, %v2569_v43 }
 0xe90   :  { %2570 = vrcp.f32 %v1036_v44 }
 0xe9a   :  { %v2571_v48 = vpop.eup %2570 }
 0xe9b   :  { %v1042_v49 = vmul.f32 %v2571_v48, %v1040_v47  ;;  %v1053_v50 = vmul.f32 %v2571_v48, %v1051_v46  ;;  %v1045_v58 = vsub.f32 1.0, %v2571_v48 }
 0xe9d   :  { %v1043_v54 = vadd.f32 %v1042_v49, %v1028_v52 }
 0xe9f   :  { %2572 = vtanh.f32 %v1043_v54 }
 0xea9   :  { %v2573_v55 = vpop.eup %2572 }
 0xeaa   :  { %1047 = vrot.lane.b32.xlu0 %v2573_v55, %s2668_s2 }
 0xec9   :  { %165 = vadd.xlane.f32.xlu0 %v164_v57 }
 0xf1c   :  { %v1048_v60 = vpop.permute.xlu0 %1047 }
 0xf1d   :  { %v1050_v61 = vmul.f32 %v1048_v60, %v1045_v58 }
 0xf1f   :  { %v3030_v62 = vadd.f32 %v1053_v50, %v1050_v61 }
 0xf21   :  { %v1056_v63 = vrot.slane %v3030_v62, 6 }
 0xf23   :  { %1057 = vrot.lane.b32.xlu1 %v1056_v63, %s2668_s2 }
 0xf47   :  { %177 = vadd.xlane.f32.xlu1 %v176_v3 }
 0xf56   :  { %v166_v10 = vpop.xlane.xlu0 %165 }
 0xf57   :  { %v183_v5 = vmul.f32 0.0052083335, %v166_v10 }
 0xf59   :  { %v185_v8 = vmul.f32 192.0, %v183_v5  ;;  %v193_v18 = vsub.f32 %v2900_v12, %v183_v5  ;;  %v194_v19 = vsub.f32 %v2903_v14, %v183_v5 }
 0xf5b   :  { %v187_v11 = vmul.f32 %v185_v8, %v183_v5 }
 0xf95   :  { %v1058_v6 = vpop.permute.xlu1 %1057 }
 0xf96   :  { %2183 = vmatmul.mubr.msk.f32.vlgmr.msra.gmra.mrb[10].mxu0 %vm159_vm2, %v1058_v6 }
 0xf97   :  { %2416 = vmatpush1.bf16.msra.mxu0 %v2776_v28  ;;  %1373 = vmatprep.mubr.f32.mxu0 %v2667_v7 }
 0xf98   :  { %2418 = vmatprep.subr.bf16.mxu0 %v2791_v34 }
 0xf9b   :  { %2420 = vmatpush1.bf16.msra.mxu0 %v2800_v37 }
 0xf9c   :  { %2422 = vmatprep.subr.bf16.mxu0 %v2812_v42 }
 0xf9f   :  { %2424 = vmatpush1.bf16.msra.mxu0 %v2836_v51 }
 0xfa0   :  { %2426 = vmatprep.subr.bf16.mxu0 %v2839_v53 }
 0xfa3   :  { %2428 = vmatpush1.bf16.msra.mxu0 %v2854_v59 }
 0xfa4   :  { %2446 = vmatprep.subr.bf16.mxu0 %v2774_v27 }
 0xfd4   :  { %v178_v13 = vpop.xlane.xlu1 %177 }
 0xfd5   :  { %v189_v16 = vsub.f32 %v178_v13, %v187_v11 }
 0xfd7   :  { %v191_v17 = vmul.f32 0.005235602, %v189_v16 }
 0xfd9   :  { %2574 = vrsqrt.f32 %v191_v17 }
 0xfe3   :  { %v2575_v20 = vpop.eup %2574 }
 0xfe4   :  { %v199_v21 = vmul.f32 %v2575_v20, %v193_v18  ;;  %v200_v23 = vmul.f32 %v2575_v20, %v194_v19 }
 0xfe6   :  { %203 = vst [vmem:[#allocation3] sm:$0xff] %v199_v21  ;;  %204 = vst.msk [vmem:[#allocation3 + $0x8] sm:$0xff] %vm159_vm2, %v200_v23 }
 0xfed   :  { %v1156_v49 = vld [vmem:[#allocation3] sm:$0x3]  ;;  %v1157_v61 = vld [vmem:[#allocation3 + $0x8] sm:$0x3] }
0x1069   :  { %v1127_v24 = vpop.f32.mrb[10].mxu0 }
0x106a   :  { %v1128_v25 = vadd.f32 %v1127_v24, %v2906_v15  ;;  %v1129_v26 = vpop.f32.mrb[11].mxu0 }
0x106b   :  { %v1130_v29 = vadd.f32 %v1129_v26, %v2911_v22 }
0x106c   :  { %v1133_v30 = vsel %vm1132_vm3, %v1128_v25, 0.0  ;;  %v1139_v31 = vmul.f32 %v1128_v25, %v1128_v25 }
0x106d   :  { %v1135_v12 = vsel %vm1134_vm4, %v1130_v29, 0.0  ;;  %v1140_v14 = vmul.f32 %v1130_v29, %v1130_v29 }
0x106e   :  { %v1136_v32 = vadd.f32 %v1135_v12, %v1133_v30  ;;  %v1141_v33 = vsel %vm1132_vm3, %v1139_v31, 0.0 }
0x106f   :  { %v1142_v35 = vsel %vm1134_vm4, %v1140_v14, 0.0 }
0x1070   :  { %1137 = vadd.xlane.f32.xlu0 %v1136_v32  ;;  %v1143_v36 = vadd.f32 %v1142_v35, %v1141_v33 }
0x1074   :  { %1144 = vadd.xlane.f32.xlu0 %v1143_v36 }
0x10fd   :  { %v1138_v38 = vpop.xlane.xlu0 %1137 }
0x10fe   :  { %v1146_v39 = vmul.f32 0.0052083335, %v1138_v38  ;;  %v1275_v38 = vld [vmem:[#allocation3] sm:$0xc] }
0x1100   :  { %v1147_v40 = vmul.f32 192.0, %v1146_v39  ;;  %v1151_v46 = vsub.f32 %v1128_v25, %v1146_v39  ;;  %v1152_v56 = vsub.f32 %v1130_v29, %v1146_v39 }
0x1101   :  { %v1145_v43 = vpop.xlane.xlu0 %1144 }
0x1102   :  { %v1148_v41 = vmul.f32 %v1147_v40, %v1146_v39 }
0x1104   :  { %v1149_v44 = vsub.f32 %v1145_v43, %v1148_v41 }
0x1106   :  { %v1150_v45 = vmul.f32 0.005235602, %v1149_v44 }
0x1108   :  { %2576 = vrsqrt.f32 %v1150_v45 }
0x1112   :  { %v2577_v47 = vpop.eup %2576 }
0x1113   :  { %v1154_v48 = vmul.f32 %v2577_v47, %v1151_v46  ;;  %v1155_v57 = vmul.f32 %v2577_v47, %v1152_v56 }
0x1115   :  { %v1158_v50 = vadd.f32 %v1156_v49, %v1154_v48 }
0x1117   :  { %v2184_v52 = vmul.f32 -1.442695, %v1158_v50 }
0x1119   :  { %2578 = vpow2.f32 %v2184_v52  ;;  %v1276_v52 = vld [vmem:[#allocation3 + $0x8] sm:$0xc] }
0x1123   :  { %v2579_v54 = vpop.eup %2578 }
0x1124   :  { %v1162_v55 = vadd.f32 1.0, %v2579_v54 }
0x1126   :  { %2580 = vrcp.f32 %v1162_v55 }
0x1130   :  { %v2581_v58 = vpop.eup %2580 }
0x1131   :  { %v1165_v60 = vmul.f32 %v2581_v58, %v1155_v57  ;;  %v1168_v2 = vsub.f32 1.0, %v2581_v58  ;;  %v1175_v6 = vmul.f32 %v2581_v58, %v1056_v63 }
0x1133   :  { %v1166_v0 = vadd.f32 %v1165_v60, %v1157_v61 }
0x1135   :  { %2582 = vtanh.f32 %v1166_v0 }
0x113f   :  { %v2583_v1 = vpop.eup %2582 }
0x1140   :  { %1170 = vrot.lane.b32.xlu1 %v2583_v1, %s2668_s2 }
0x11b2   :  { %v1171_v3 = vpop.permute.xlu1 %1170 }
0x11b3   :  { %v1173_v10 = vmul.f32 %v1171_v3, %v1168_v2 }
0x11b5   :  { %v1176_v5 = vadd.f32 %v1175_v6, %v1173_v10 }
0x11b7   :  { %1178 = vrot.lane.b32.xlu0 %v1176_v5, %s2668_s2  ;;  %v1299_v46 = vrot.slane %v1176_v5, 6 }
0x1229   :  { %v1179_v8 = vpop.permute.xlu0 %1178 }
0x122a   :  { %2185 = vmatmul.mubr.msk.f32.vlgmr.msra.gmra.mrb[10].mxu1 %vm159_vm2, %v1179_v8 }
0x122b   :  { %2432 = vmatpush1.bf16.msra.mxu1 %v2776_v28  ;;  %1500 = vmatprep.mubr.f32.mxu1 %v2667_v7 }
0x122c   :  { %2434 = vmatprep.subr.bf16.mxu1 %v2791_v34 }
0x122f   :  { %2436 = vmatpush1.bf16.msra.mxu1 %v2800_v37 }
0x1230   :  { %2438 = vmatprep.subr.bf16.mxu1 %v2812_v42 }
0x1233   :  { %2440 = vmatpush1.bf16.msra.mxu1 %v2836_v51 }
0x1234   :  { %2442 = vmatprep.subr.bf16.mxu1 %v2839_v53 }
0x1237   :  { %2444 = vmatpush1.bf16.msra.mxu1 %v2854_v59 }
0x1238   :  { %2462 = vmatprep.subr.bf16.mxu1 %v2774_v27 }
0x12fd   :  { %v1248_v62 = vpop.f32.mrb[10].mxu1 }
0x12fe   :  { %v1249_v63 = vadd.f32 %v1248_v62, %v2906_v15  ;;  %v1250_v11 = vpop.f32.mrb[11].mxu1 }
0x12ff   :  { %v1251_v13 = vadd.f32 %v1250_v11, %v2911_v22 }
0x1300   :  { %v1253_v16 = vsel %vm1132_vm3, %v1249_v63, 0.0  ;;  %v1258_v17 = vmul.f32 %v1249_v63, %v1249_v63 }
0x1301   :  { %v1254_v18 = vsel %vm1134_vm4, %v1251_v13, 0.0  ;;  %v1259_v19 = vmul.f32 %v1251_v13, %v1251_v13 }
0x1302   :  { %v1255_v20 = vadd.f32 %v1254_v18, %v1253_v16  ;;  %v1260_v21 = vsel %vm1132_vm3, %v1258_v17, 0.0 }
0x1303   :  { %v1261_v23 = vsel %vm1134_vm4, %v1259_v19, 0.0 }
0x1304   :  { %1256 = vadd.xlane.f32.xlu1 %v1255_v20  ;;  %v1262_v24 = vadd.f32 %v1261_v23, %v1260_v21 }
0x1306   :  { %1263 = vadd.xlane.f32.xlu0 %v1262_v24 }
0x1391   :  { %v1257_v25 = vpop.xlane.xlu1 %1256 }
0x1392   :  { %v1265_v26 = vmul.f32 0.0052083335, %v1257_v25 }
0x1393   :  { %v1264_v31 = vpop.xlane.xlu0 %1263 }
0x1394   :  { %v1266_v29 = vmul.f32 192.0, %v1265_v26  ;;  %v1270_v32 = vsub.f32 %v1249_v63, %v1265_v26  ;;  %v1271_v44 = vsub.f32 %v1251_v13, %v1265_v26 }
0x1396   :  { %v1267_v30 = vmul.f32 %v1266_v29, %v1265_v26 }
0x1398   :  { %v1268_v12 = vsub.f32 %v1264_v31, %v1267_v30  ;;  %v1402_v31 = vld [vmem:[#allocation3] sm:$0x30] }
0x139a   :  { %v1269_v14 = vmul.f32 0.005235602, %v1268_v12 }
0x139c   :  { %2584 = vrsqrt.f32 %v1269_v14 }
0x13a6   :  { %v2585_v33 = vpop.eup %2584 }
0x13a7   :  { %v1273_v35 = vmul.f32 %v2585_v33, %v1270_v32  ;;  %v1274_v45 = vmul.f32 %v2585_v33, %v1271_v44  ;;  %v1403_v44 = vld [vmem:[#allocation3 + $0x8] sm:$0x30] }
0x13a9   :  { %v1278_v36 = vrot.slane %v1273_v35, 6  ;;  %v1288_v47 = vrot.slane %v1274_v45, 6 }
0x13ab   :  { %v1280_v39 = vadd.f32 %v1278_v36, %v1275_v38 }
0x13ad   :  { %v2186_v40 = vmul.f32 -1.442695, %v1280_v39 }
0x13af   :  { %2586 = vpow2.f32 %v2186_v40 }
0x13b9   :  { %v2587_v41 = vpop.eup %2586 }
0x13ba   :  { %v1284_v43 = vadd.f32 1.0, %v2587_v41 }
0x13bc   :  { %2588 = vrcp.f32 %v1284_v43 }
0x13c6   :  { %v2589_v48 = vpop.eup %2588 }
0x13c7   :  { %v1290_v49 = vmul.f32 %v2589_v48, %v1288_v47  ;;  %v1301_v50 = vmul.f32 %v2589_v48, %v1299_v46  ;;  %v1293_v56 = vsub.f32 1.0, %v2589_v48 }
0x13c9   :  { %v1291_v54 = vadd.f32 %v1290_v49, %v1276_v52 }
0x13cb   :  { %2590 = vtanh.f32 %v1291_v54 }
0x13d5   :  { %v2591_v55 = vpop.eup %2590 }
0x13d6   :  { %1295 = vrot.lane.b32.xlu1 %v2591_v55, %s2668_s2 }
0x1448   :  { %v1296_v57 = vpop.permute.xlu1 %1295 }
0x1449   :  { %v1298_v58 = vmul.f32 %v1296_v57, %v1293_v56 }
0x144b   :  { %v1302_v60 = vadd.f32 %v1301_v50, %v1298_v58 }
0x144d   :  { %v1304_v61 = vrot.slane %v1302_v60, 2  ;;  %v1426_v38 = vrot.slane %v1302_v60, 6 }
0x144f   :  { %1305 = vrot.lane.b32.xlu0 %v1304_v61, %s2668_s2 }
0x14c1   :  { %v1306_v0 = vpop.permute.xlu0 %1305 }
0x14c2   :  { %2187 = vmatmul.mubr.msk.f32.vlgmr.msra.gmra.mrb[12].mxu0 %vm159_vm2, %v1306_v0 }
0x14c3   :  { %2448 = vmatpush1.bf16.msra.mxu0 %v2776_v28  ;;  %1627 = vmatprep.mubr.f32.mxu0 %v2667_v7 }
0x14c4   :  { %2450 = vmatprep.subr.bf16.mxu0 %v2791_v34 }
0x14c7   :  { %2452 = vmatpush1.bf16.msra.mxu0 %v2800_v37 }
0x14c8   :  { %2454 = vmatprep.subr.bf16.mxu0 %v2812_v42 }
0x14cb   :  { %2456 = vmatpush1.bf16.msra.mxu0 %v2836_v51 }
0x14cc   :  { %2458 = vmatprep.subr.bf16.mxu0 %v2839_v53 }
0x14cf   :  { %2460 = vmatpush1.bf16.msra.mxu0 %v2854_v59 }
0x14d0   :  { %2478 = vmatprep.subr.bf16.mxu0 %v2774_v27 }
0x1595   :  { %v1375_v1 = vpop.f32.mrb[12].mxu0 }
0x1596   :  { %v1376_v2 = vadd.f32 %v1375_v1, %v2906_v15  ;;  %v1377_v3 = vpop.f32.mrb[13].mxu0 }
0x1597   :  { %v1378_v6 = vadd.f32 %v1377_v3, %v2911_v22 }
0x1598   :  { %v1380_v10 = vsel %vm1132_vm3, %v1376_v2, 0.0  ;;  %v1385_v5 = vmul.f32 %v1376_v2, %v1376_v2 }
0x1599   :  { %v1381_v8 = vsel %vm1134_vm4, %v1378_v6, 0.0  ;;  %v1386_v62 = vmul.f32 %v1378_v6, %v1378_v6 }
0x159a   :  { %v1382_v63 = vadd.f32 %v1381_v8, %v1380_v10  ;;  %v1387_v11 = vsel %vm1132_vm3, %v1385_v5, 0.0 }
0x159b   :  { %v1388_v13 = vsel %vm1134_vm4, %v1386_v62, 0.0 }
0x159c   :  { %1383 = vadd.xlane.f32.xlu1 %v1382_v63  ;;  %v1389_v16 = vadd.f32 %v1388_v13, %v1387_v11 }
0x159e   :  { %1390 = vadd.xlane.f32.xlu0 %v1389_v16 }
0x1629   :  { %v1384_v17 = vpop.xlane.xlu1 %1383 }
0x162a   :  { %v1392_v18 = vmul.f32 0.0052083335, %v1384_v17 }
0x162b   :  { %v1391_v21 = vpop.xlane.xlu0 %1390 }
0x162c   :  { %v1393_v19 = vmul.f32 192.0, %v1392_v18  ;;  %v1397_v25 = vsub.f32 %v1376_v2, %v1392_v18  ;;  %v1398_v35 = vsub.f32 %v1378_v6, %v1392_v18 }
0x162e   :  { %v1394_v20 = vmul.f32 %v1393_v19, %v1392_v18 }
0x1630   :  { %v1395_v23 = vsub.f32 %v1391_v21, %v1394_v20  ;;  %v1529_v20 = vld [vmem:[#allocation3] sm:$0xc0] }
0x1632   :  { %v1396_v24 = vmul.f32 0.005235602, %v1395_v23 }
0x1634   :  { %2592 = vrsqrt.f32 %v1396_v24 }
0x163e   :  { %v2593_v26 = vpop.eup %2592 }
0x163f   :  { %v1400_v29 = vmul.f32 %v2593_v26, %v1397_v25  ;;  %v1401_v36 = vmul.f32 %v2593_v26, %v1398_v35 }
0x1641   :  { %v1405_v30 = vrot.slane %v1400_v29, 4  ;;  %v1415_v39 = vrot.slane %v1401_v36, 4 }
0x1643   :  { %v1407_v12 = vadd.f32 %v1405_v30, %v1402_v31 }
0x1645   :  { %v2188_v14 = vmul.f32 -1.442695, %v1407_v12 }
0x1647   :  { %2594 = vpow2.f32 %v2188_v14 }
0x1651   :  { %v2595_v32 = vpop.eup %2594 }
0x1652   :  { %v1411_v33 = vadd.f32 1.0, %v2595_v32 }
0x1654   :  { %2596 = vrcp.f32 %v1411_v33  ;;  %v1530_v33 = vld [vmem:[#allocation3 + $0x8] sm:$0xc0] }
0x165e   :  { %v2597_v40 = vpop.eup %2596 }
0x165f   :  { %v1417_v41 = vmul.f32 %v2597_v40, %v1415_v39  ;;  %v1428_v43 = vmul.f32 %v2597_v40, %v1426_v38  ;;  %v1420_v47 = vsub.f32 1.0, %v2597_v40  ;;  %v167_v38 = vsel %vm159_vm2, %v2939_v9, 0.0 }
0x1660   :  { %v168_v39 = vadd.f32 %v167_v38, %v2936_v4 }
0x1661   :  { %v1418_v45 = vadd.f32 %v1417_v41, %v1403_v44 }
0x1663   :  { %2598 = vtanh.f32 %v1418_v45 }
0x166d   :  { %v2599_v46 = vpop.eup %2598 }
0x166e   :  { %1422 = vrot.lane.b32.xlu1 %v2599_v46, %s2668_s2  ;;  %v174_v46 = vmul.f32 %v2939_v9, %v2939_v9 }
0x16e0   :  { %v1423_v48 = vpop.permute.xlu1 %1422 }
0x16e1   :  { %v1425_v49 = vmul.f32 %v1423_v48, %v1420_v47  ;;  %v173_v47 = vmul.f32 %v2936_v4, %v2936_v4  ;;  %v179_v48 = vsel %vm159_vm2, %v174_v46, 0.0 }
0x16e3   :  { %v1429_v50 = vadd.f32 %v1428_v43, %v1425_v49  ;;  %v180_v49 = vadd.f32 %v179_v48, %v173_v47 }
0x16e5   :  { %v1431_v52 = vrot.slane %v1429_v50, 4  ;;  %v1553_v30 = vrot.slane %v1429_v50, 6 }
0x16e7   :  { %1432 = vrot.lane.b32.xlu0 %v1431_v52, %s2668_s2 }
0x1759   :  { %v1433_v54 = vpop.permute.xlu0 %1432 }
0x175a   :  { %2189 = vmatmul.mubr.msk.f32.vlgmr.msra.gmra.mrb[12].mxu1 %vm159_vm2, %v1433_v54 }
0x175b   :  { %2464 = vmatpush1.bf16.msra.mxu1 %v2776_v28  ;;  %1746 = vmatprep.mubr.f32.mxu1 %v2667_v7 }
0x175c   :  { %2466 = vmatprep.subr.bf16.mxu1 %v2791_v34 }
0x175f   :  { %2468 = vmatpush1.bf16.msra.mxu1 %v2800_v37 }
0x1760   :  { %2470 = vmatprep.subr.bf16.mxu1 %v2812_v42 }
0x1763   :  { %2472 = vmatpush1.bf16.msra.mxu1 %v2836_v51 }
0x1764   :  { %2474 = vmatprep.subr.bf16.mxu1 %v2839_v53 }
0x1767   :  { %2476 = vmatpush1.bf16.msra.mxu1 %v2854_v59 }
0x1768   :  { %2494 = vmatprep.subr.bf16.mxu1 %v2774_v27 }
0x182d   :  { %v1502_v55 = vpop.f32.mrb[12].mxu1 }
0x182e   :  { %v1503_v56 = vadd.f32 %v1502_v55, %v2906_v15  ;;  %v1504_v57 = vpop.f32.mrb[13].mxu1 }
0x182f   :  { %v1505_v58 = vadd.f32 %v1504_v57, %v2911_v22 }
0x1830   :  { %v1507_v60 = vsel %vm1132_vm3, %v1503_v56, 0.0  ;;  %v1512_v61 = vmul.f32 %v1503_v56, %v1503_v56 }
0x1831   :  { %v1508_v0 = vsel %vm1134_vm4, %v1505_v58, 0.0  ;;  %v1513_v1 = vmul.f32 %v1505_v58, %v1505_v58 }
0x1832   :  { %v1509_v2 = vadd.f32 %v1508_v0, %v1507_v60  ;;  %v1514_v3 = vsel %vm1132_vm3, %v1512_v61, 0.0  ;;  %v2642_v60 = vld [vmem:[#allocation2 + $0x10] sm:$0xff] }
0x1833   :  { %v1515_v6 = vsel %vm1134_vm4, %v1513_v1, 0.0 }
0x1834   :  { %1510 = vadd.xlane.f32.xlu1 %v1509_v2  ;;  %v1516_v10 = vadd.f32 %v1515_v6, %v1514_v3 }
0x1836   :  { %1517 = vadd.xlane.f32.xlu0 %v1516_v10 }
0x18c1   :  { %v1511_v27 = vpop.xlane.xlu1 %1510 }
0x18c2   :  { %v1519_v5 = vmul.f32 0.0052083335, %v1511_v27 }
0x18c3   :  { %v1518_v63 = vpop.xlane.xlu0 %1517 }
0x18c4   :  { %v1520_v8 = vmul.f32 192.0, %v1519_v5  ;;  %v1524_v16 = vsub.f32 %v1503_v56, %v1519_v5  ;;  %v1525_v26 = vsub.f32 %v1505_v58, %v1519_v5 }
0x18c6   :  { %v1521_v62 = vmul.f32 %v1520_v8, %v1519_v5 }
0x18c8   :  { %v1522_v11 = vsub.f32 %v1518_v63, %v1521_v62 }
0x18ca   :  { %v1523_v13 = vmul.f32 0.005235602, %v1522_v11 }
0x18cc   :  { %2600 = vrsqrt.f32 %v1523_v13 }
0x18d6   :  { %v2601_v17 = vpop.eup %2600 }
0x18d7   :  { %v1527_v18 = vmul.f32 %v2601_v17, %v1524_v16  ;;  %v1528_v29 = vmul.f32 %v2601_v17, %v1525_v26 }
0x18d9   :  { %v1532_v19 = vrot.slane %v1527_v18, 2  ;;  %v1542_v31 = vrot.slane %v1528_v29, 2 }
0x18db   :  { %v1534_v21 = vadd.f32 %v1532_v19, %v1529_v20 }
0x18dd   :  { %v2190_v23 = vmul.f32 -1.442695, %v1534_v21 }
0x18df   :  { %2602 = vpow2.f32 %v2190_v23 }
0x18e9   :  { %v2603_v24 = vpop.eup %2602 }
0x18ea   :  { %v1538_v25 = vadd.f32 1.0, %v2603_v24 }
0x18ec   :  { %2604 = vrcp.f32 %v1538_v25 }
0x18f6   :  { %v2605_v12 = vpop.eup %2604 }
0x18f7   :  { %v1544_v14 = vmul.f32 %v2605_v12, %v1542_v31  ;;  %v1555_v32 = vmul.f32 %v2605_v12, %v1553_v30  ;;  %v1547_v40 = vsub.f32 1.0, %v2605_v12 }
0x18f9   :  { %v1545_v35 = vadd.f32 %v1544_v14, %v1530_v33 }
0x18fb   :  { %2606 = vtanh.f32 %v1545_v35 }
0x1905   :  { %v2607_v36 = vpop.eup %2606 }
0x1906   :  { %1549 = vrot.lane.b32.xlu1 %v2607_v36, %s2668_s2 }
0x192a   :  { %169 = vadd.xlane.f32.xlu1 %v168_v39 }
0x1978   :  { %v1550_v41 = vpop.permute.xlu1 %1549 }
0x1979   :  { %v1552_v43 = vmul.f32 %v1550_v41, %v1547_v40 }
0x197b   :  { %v3120_v44 = vadd.f32 %v1555_v32, %v1552_v43 }
0x197d   :  { %v1558_v45 = vrot.slane %v3120_v44, 6 }
0x197f   :  { %1559 = vrot.lane.b32.xlu0 %v1558_v45, %s2668_s2 }
0x199e   :  { %181 = vadd.xlane.f32.xlu0 %v180_v49 }
0x19b7   :  { %v170_v4 = vpop.xlane.xlu1 %169 }
0x19b8   :  { %v184_v52 = vmul.f32 0.0052083335, %v170_v4 }
0x19ba   :  { %v186_v54 = vmul.f32 192.0, %v184_v52  ;;  %v195_v61 = vsub.f32 %v2642_v60, %v184_v52  ;;  %v196_v0 = vsub.f32 %v2939_v9, %v184_v52 }
0x19bc   :  { %v188_v55 = vmul.f32 %v186_v54, %v184_v52 }
0x19f1   :  { %v1560_v50 = vpop.permute.xlu0 %1559 }
0x19f2   :  { %2191 = vmatmul.mubr.msk.f32.vlgmr.msra.gmra.mrb[14].mxu0 %vm159_vm2, %v1560_v50 }
0x19f3   :  { %2480 = vmatpush1.bf16.msra.mxu0 %v2776_v28  ;;  %1873 = vmatprep.mubr.f32.mxu0 %v2667_v7 }
0x19f4   :  { %2482 = vmatprep.subr.bf16.mxu0 %v2791_v34 }
0x19f7   :  { %2484 = vmatpush1.bf16.msra.mxu0 %v2800_v37 }
0x19f8   :  { %2486 = vmatprep.subr.bf16.mxu0 %v2812_v42 }
0x19fb   :  { %2488 = vmatpush1.bf16.msra.mxu0 %v2836_v51 }
0x19fc   :  { %2490 = vmatprep.subr.bf16.mxu0 %v2839_v53 }
0x19ff   :  { %2492 = vmatpush1.bf16.msra.mxu0 %v2854_v59 }
0x1a2b   :  { %v182_v56 = vpop.xlane.xlu0 %181 }
0x1a2c   :  { %v190_v57 = vsub.f32 %v182_v56, %v188_v55 }
0x1a2e   :  { %v192_v58 = vmul.f32 0.005235602, %v190_v57 }
0x1a30   :  { %2608 = vrsqrt.f32 %v192_v58 }
0x1a3a   :  { %v2609_v1 = vpop.eup %2608 }
0x1a3b   :  { %v201_v2 = vmul.f32 %v2609_v1, %v195_v61  ;;  %v202_v3 = vmul.f32 %v2609_v1, %v196_v0 }
0x1a3d   :  { %205 = vst [vmem:[#allocation3 + $0x10] sm:$0xff] %v201_v2  ;;  %206 = vst.msk [vmem:[#allocation3 + $0x18] sm:$0xff] %vm159_vm2, %v202_v3 }
0x1a44   :  { %v1656_v31 = vld [vmem:[#allocation3 + $0x10] sm:$0x3]  ;;  %v1657_v40 = vld [vmem:[#allocation3 + $0x18] sm:$0x3] }
0x1ac5   :  { %v1629_v6 = vpop.f32.mrb[14].mxu0 }
0x1ac6   :  { %v1630_v10 = vadd.f32 %v1629_v6, %v2906_v15  ;;  %v1631_v27 = vpop.f32.mrb[15].mxu0 }
0x1ac7   :  { %v1632_v5 = vadd.f32 %v1631_v27, %v2911_v22  ;;  %v1775_v27 = vld [vmem:[#allocation3 + $0x10] sm:$0xc] }
0x1ac8   :  { %v1634_v8 = vsel %vm1132_vm3, %v1630_v10, 0.0  ;;  %v1639_v62 = vmul.f32 %v1630_v10, %v1630_v10 }
0x1ac9   :  { %v1635_v63 = vsel %vm1134_vm4, %v1632_v5, 0.0  ;;  %v1640_v11 = vmul.f32 %v1632_v5, %v1632_v5 }
0x1aca   :  { %v1636_v13 = vadd.f32 %v1635_v63, %v1634_v8  ;;  %v1641_v9 = vsel %vm1132_vm3, %v1639_v62, 0.0 }
0x1acb   :  { %v1642_v16 = vsel %vm1134_vm4, %v1640_v11, 0.0 }
0x1acc   :  { %1637 = vadd.xlane.f32.xlu1 %v1636_v13  ;;  %v1643_v17 = vadd.f32 %v1642_v16, %v1641_v9 }
0x1ace   :  { %1644 = vadd.xlane.f32.xlu0 %v1643_v17 }
0x1b59   :  { %v1638_v18 = vpop.xlane.xlu1 %1637 }
0x1b5a   :  { %v1646_v19 = vmul.f32 0.0052083335, %v1638_v18 }
0x1b5b   :  { %v1645_v23 = vpop.xlane.xlu0 %1644 }
0x1b5c   :  { %v1647_v20 = vmul.f32 192.0, %v1646_v19  ;;  %v1651_v26 = vsub.f32 %v1630_v10, %v1646_v19  ;;  %v1652_v35 = vsub.f32 %v1632_v5, %v1646_v19 }
0x1b5e   :  { %v1648_v21 = vmul.f32 %v1647_v20, %v1646_v19  ;;  %v1776_v20 = vld [vmem:[#allocation3 + $0x18] sm:$0xc] }
0x1b60   :  { %v1649_v24 = vsub.f32 %v1645_v23, %v1648_v21 }
0x1b62   :  { %v1650_v25 = vmul.f32 0.005235602, %v1649_v24 }
0x1b64   :  { %2610 = vrsqrt.f32 %v1650_v25 }
0x1b6e   :  { %v2611_v29 = vpop.eup %2610 }
0x1b6f   :  { %v1654_v30 = vmul.f32 %v2611_v29, %v1651_v26  ;;  %v1655_v36 = vmul.f32 %v2611_v29, %v1652_v35 }
0x1b71   :  { %v1658_v12 = vadd.f32 %v1656_v31, %v1654_v30 }
0x1b73   :  { %v2192_v14 = vmul.f32 -1.442695, %v1658_v12 }
0x1b75   :  { %2612 = vpow2.f32 %v2192_v14 }
0x1b7f   :  { %v2613_v32 = vpop.eup %2612 }
0x1b80   :  { %v1662_v33 = vadd.f32 1.0, %v2613_v32 }
0x1b82   :  { %2614 = vrcp.f32 %v1662_v33 }
0x1b8c   :  { %v2615_v38 = vpop.eup %2614 }
0x1b8d   :  { %v1665_v39 = vmul.f32 %v2615_v38, %v1655_v36  ;;  %v1668_v46 = vsub.f32 1.0, %v2615_v38  ;;  %v1675_v48 = vmul.f32 %v2615_v38, %v1558_v45 }
0x1b8f   :  { %v1666_v41 = vadd.f32 %v1665_v39, %v1657_v40 }
0x1b91   :  { %2616 = vtanh.f32 %v1666_v41 }
0x1b9b   :  { %v2617_v43 = vpop.eup %2616 }
0x1b9c   :  { %1670 = vrot.lane.b32.xlu1 %v2617_v43, %s2668_s2 }
0x1c0e   :  { %v1671_v47 = vpop.permute.xlu1 %1670 }
0x1c0f   :  { %v1673_v49 = vmul.f32 %v1671_v47, %v1668_v46 }
0x1c11   :  { %v1676_v50 = vadd.f32 %v1675_v48, %v1673_v49 }
0x1c13   :  { %1678 = vrot.lane.b32.xlu0 %v1676_v50, %s2668_s2  ;;  %v1799_v9 = vrot.slane %v1676_v50, 6 }
0x1c85   :  { %v1679_v4 = vpop.permute.xlu0 %1678 }
0x1c86   :  { %2193 = vmatmul.mubr.msk.f32.vlgmr.msra.gmra.mrb[14].mxu1 %vm159_vm2, %v1679_v4 }
0x1c87   :  { %2496 = vmatpush1.bf16.msra.mxu1 %v2776_v28  ;;  %2000 = vmatprep.mubr.f32.mxu1 %v2667_v7 }
0x1c88   :  { %2498 = vmatprep.subr.bf16.mxu1 %v2791_v34 }
0x1c8b   :  { %2500 = vmatpush1.bf16.msra.mxu1 %v2800_v37 }
0x1c8c   :  { %2502 = vmatprep.subr.bf16.mxu1 %v2812_v42 }
0x1c8f   :  { %2504 = vmatpush1.bf16.msra.mxu1 %v2836_v51 }
0x1c90   :  { %2506 = vmatprep.subr.bf16.mxu1 %v2839_v53 }
0x1c93   :  { %2508 = vmatpush1.bf16.msra.mxu1 %v2854_v59 }
0x1d59   :  { %v1748_v44 = vpop.f32.mrb[14].mxu1 }
0x1d5a   :  { %v1749_v45 = vadd.f32 %v1748_v44, %v2906_v15  ;;  %v1750_v52 = vpop.f32.mrb[15].mxu1 }
0x1d5b   :  { %v1751_v28 = vadd.f32 %v1750_v52, %v2911_v22 }
0x1d5c   :  { %v1753_v54 = vsel %vm1132_vm3, %v1749_v45, 0.0  ;;  %v1758_v55 = vmul.f32 %v1749_v45, %v1749_v45 }
0x1d5d   :  { %v1754_v34 = vsel %vm1134_vm4, %v1751_v28, 0.0  ;;  %v1759_v37 = vmul.f32 %v1751_v28, %v1751_v28 }
0x1d5e   :  { %v1755_v56 = vadd.f32 %v1754_v34, %v1753_v54  ;;  %v1760_v42 = vsel %vm1132_vm3, %v1758_v55, 0.0  ;;  %v1902_v34 = vld [vmem:[#allocation3 + $0x10] sm:$0x30] }
0x1d5f   :  { %v1761_v51 = vsel %vm1134_vm4, %v1759_v37, 0.0 }
0x1d60   :  { %1756 = vadd.xlane.f32.xlu1 %v1755_v56  ;;  %v1762_v53 = vadd.f32 %v1761_v51, %v1760_v42 }
0x1d62   :  { %1763 = vadd.xlane.f32.xlu0 %v1762_v53 }
0x1ded   :  { %v1757_v59 = vpop.xlane.xlu1 %1756 }
0x1dee   :  { %v1765_v57 = vmul.f32 0.0052083335, %v1757_v59 }
0x1def   :  { %v1764_v61 = vpop.xlane.xlu0 %1763 }
0x1df0   :  { %v1766_v58 = vmul.f32 192.0, %v1765_v57  ;;  %v1770_v2 = vsub.f32 %v1749_v45, %v1765_v57  ;;  %v1771_v11 = vsub.f32 %v1751_v28, %v1765_v57 }
0x1df2   :  { %v1767_v60 = vmul.f32 %v1766_v58, %v1765_v57 }
0x1df4   :  { %v1768_v0 = vsub.f32 %v1764_v61, %v1767_v60 }
0x1df6   :  { %v1769_v1 = vmul.f32 0.005235602, %v1768_v0 }
0x1df8   :  { %2618 = vrsqrt.f32 %v1769_v1  ;;  %v1903_v1 = vld [vmem:[#allocation3 + $0x18] sm:$0x30] }
0x1e02   :  { %v2619_v3 = vpop.eup %2618 }
0x1e03   :  { %v1773_v6 = vmul.f32 %v2619_v3, %v1770_v2  ;;  %v1774_v13 = vmul.f32 %v2619_v3, %v1771_v11 }
0x1e05   :  { %v1778_v10 = vrot.slane %v1773_v6, 6  ;;  %v1788_v16 = vrot.slane %v1774_v13, 6 }
0x1e07   :  { %v1780_v5 = vadd.f32 %v1778_v10, %v1775_v27 }
0x1e09   :  { %v2194_v8 = vmul.f32 -1.442695, %v1780_v5 }
0x1e0b   :  { %2620 = vpow2.f32 %v2194_v8 }
0x1e15   :  { %v2621_v62 = vpop.eup %2620 }
0x1e16   :  { %v1784_v63 = vadd.f32 1.0, %v2621_v62 }
0x1e18   :  { %2622 = vrcp.f32 %v1784_v63 }
0x1e22   :  { %v2623_v17 = vpop.eup %2622 }
0x1e23   :  { %v1790_v18 = vmul.f32 %v2623_v17, %v1788_v16  ;;  %v1801_v19 = vmul.f32 %v2623_v17, %v1799_v9  ;;  %v1793_v24 = vsub.f32 1.0, %v2623_v17 }
0x1e25   :  { %v1791_v21 = vadd.f32 %v1790_v18, %v1776_v20 }
0x1e27   :  { %2624 = vtanh.f32 %v1791_v21 }
0x1e31   :  { %v2625_v23 = vpop.eup %2624 }
0x1e32   :  { %1795 = vrot.lane.b32.xlu1 %v2625_v23, %s2668_s2 }
0x1ea4   :  { %v1796_v25 = vpop.permute.xlu1 %1795 }
0x1ea5   :  { %v1798_v26 = vmul.f32 %v1796_v25, %v1793_v24 }
0x1ea7   :  { %v1802_v29 = vadd.f32 %v1801_v19, %v1798_v26 }
0x1ea9   :  { %v1804_v30 = vrot.slane %v1802_v29, 2  ;;  %v1926_v57 = vrot.slane %v1802_v29, 6 }
0x1eab   :  { %1805 = vrot.lane.b32.xlu0 %v1804_v30, %s2668_s2 }
0x1f1d   :  { %v1806_v31 = vpop.permute.xlu0 %1805 }
0x1f1e   :  { %2195 = vmatmul.mubr.msk.f32.vlgmr.msra.gmra.mrb[16].mxu0 %vm159_vm2, %v1806_v31 }
0x1f1f   :  { %2226 = vmatprep.mubr.msk.f32.mxu0 %vm2670_vm5, %v2667_v7  ;;  %v2063_v7 = vld [vmem:[%s3233_s5 + $0x30] sm:$0xff] }
0x1ff1   :  { %v1875_v12 = vpop.f32.mrb[16].mxu0 }
0x1ff2   :  { %v1876_v14 = vadd.f32 %v1875_v12, %v2906_v15  ;;  %v1877_v32 = vpop.f32.mrb[17].mxu0 }
0x1ff3   :  { %v1878_v33 = vadd.f32 %v1877_v32, %v2911_v22 }
0x1ff4   :  { %v1880_v35 = vsel %vm1132_vm3, %v1876_v14, 0.0  ;;  %v1885_v36 = vmul.f32 %v1876_v14, %v1876_v14 }
0x1ff5   :  { %v1881_v38 = vsel %vm1134_vm4, %v1878_v33, 0.0  ;;  %v1886_v39 = vmul.f32 %v1878_v33, %v1878_v33 }
0x1ff6   :  { %v1882_v40 = vadd.f32 %v1881_v38, %v1880_v35  ;;  %v1887_v41 = vsel %vm1132_vm3, %v1885_v36, 0.0  ;;  %v2029_v35 = vld [vmem:[#allocation3 + $0x10] sm:$0xc0] }
0x1ff7   :  { %v1888_v43 = vsel %vm1134_vm4, %v1886_v39, 0.0 }
0x1ff8   :  { %1883 = vadd.xlane.f32.xlu1 %v1882_v40  ;;  %v1889_v46 = vadd.f32 %v1888_v43, %v1887_v41 }
0x1ffa   :  { %1890 = vadd.xlane.f32.xlu0 %v1889_v46 }
0x2085   :  { %v1884_v47 = vpop.xlane.xlu1 %1883 }
0x2086   :  { %v1892_v48 = vmul.f32 0.0052083335, %v1884_v47 }
0x2087   :  { %v1891_v4 = vpop.xlane.xlu0 %1890 }
0x2088   :  { %v1893_v49 = vmul.f32 192.0, %v1892_v48  ;;  %v1897_v52 = vsub.f32 %v1876_v14, %v1892_v48  ;;  %v1898_v53 = vsub.f32 %v1878_v33, %v1892_v48 }
0x208a   :  { %v1894_v50 = vmul.f32 %v1893_v49, %v1892_v48 }
0x208c   :  { %v1895_v44 = vsub.f32 %v1891_v4, %v1894_v50  ;;  %v2030_v4 = vld [vmem:[#allocation3 + $0x18] sm:$0xc0] }
0x208e   :  { %v1896_v45 = vmul.f32 0.005235602, %v1895_v44 }
0x2090   :  { %2626 = vrsqrt.f32 %v1896_v45  ;;  %v2057_v45 = vld [vmem:[%s3233_s5] sm:$0xff] }
0x209a   :  { %v2627_v28 = vpop.eup %2626 }
0x209b   :  { %v1900_v54 = vmul.f32 %v2627_v28, %v1897_v52  ;;  %v1901_v59 = vmul.f32 %v2627_v28, %v1898_v53  ;;  %v2058_v52 = vld [vmem:[%s3233_s5 + $0x8] sm:$0xff]  ;;  %v2059_v28 = vld [vmem:[%s3233_s5 + $0x10] sm:$0xff] }
0x209d   :  { %v1905_v55 = vrot.slane %v1900_v54, 4  ;;  %v1915_v58 = vrot.slane %v1901_v59, 4  ;;  %v2669_v54 = vmov 0.0|0.0   ;;  %v2064_v59 = vld [vmem:[%s3233_s5 + $0x38] sm:$0xff] }
0x209e   :  { %2509 = vmatprep.subr.bf16.mxu0 %v2669_v54 }
0x209f   :  { %v1907_v37 = vadd.f32 %v1905_v55, %v1902_v34  ;;  %v2510_v55 = vpack.c.bf16 %v2058_v52, %v2057_v45  ;;  %v2060_v34 = vld [vmem:[%s3233_s5 + $0x18] sm:$0xff] }
0x20a1   :  { %v2196_v56 = vmul.f32 -1.442695, %v1907_v37  ;;  %2511 = vmatpush3.bf16.msra.mxu0 %v2510_v55  ;;  %v2513_v37 = vpack.c.bf16 %v2060_v34, %v2059_v28 }
0x20a2   :  { %2512 = vmatprep.subr.bf16.mxu0 %v2669_v54 }
0x20a3   :  { %2628 = vpow2.f32 %v2196_v56  ;;  %v2061_v56 = vld [vmem:[%s3233_s5 + $0x20] sm:$0xff] }
0x20a5   :  { %2514 = vmatpush3.bf16.msra.mxu0 %v2513_v37 }
0x20a6   :  { %2515 = vmatprep.subr.bf16.mxu0 %v2669_v54 }
0x20ad   :  { %v2629_v42 = vpop.eup %2628 }
0x20ae   :  { %v1911_v51 = vadd.f32 1.0, %v2629_v42  ;;  %v2062_v42 = vld [vmem:[%s3233_s5 + $0x28] sm:$0xff]  ;;  %s2156_s5 = sshll.u32 %s2671_s14, 4  ;;  %s2157_s5 = int_to_ptr.vmem [resolvable:$true] %s2156_s5 }
0x20af   :  { %v2516_v53 = vpack.c.bf16 %v2062_v42, %v2061_v56  ;;  %s2643_s15 = scalar_lea.vmem %s2157_s5, 32  ;;  %p2648_p1 = scmp.lt.s32.totalorder %s2157_s5, %s2157_s5 }
0x20b0   :  { %2630 = vrcp.f32 %v1911_v51  ;;  %p2644_p0 = scmp.ne.s32.totalorder %s2157_s5, %s2643_s15  ;;  %p2649_p2 = scmp.lt.s32.totalorder %s2643_s15, %s2643_s15 }
0x20b1   :  { %2517 = vmatpush3.bf16.msra.mxu0 %v2516_v53 }
0x20b2   :  { %2518 = vmatprep.subr.bf16.mxu0 %v2669_v54  ;;  %p2650_p3 = por %p2649_p2, %p2648_p1 }
0x20b4   :  { %p2651_p4 = pnand %p2650_p3, %p2644_p0 }
0x20ba   :  { %v2631_v60 = vpop.eup %2630 }
0x20bb   :  { %v1917_v61 = vmul.f32 %v2631_v60, %v1915_v58  ;;  %v1928_v0 = vmul.f32 %v2631_v60, %v1926_v57  ;;  %v1920_v6 = vsub.f32 1.0, %v2631_v60  ;;  %v2519_v57 = vpack.c.bf16 %v2064_v59, %v2063_v7 }
0x20bd   :  { %v1918_v2 = vadd.f32 %v1917_v61, %v1903_v1  ;;  %2520 = vmatpush3.bf16.msra.mxu0 %v2519_v57 }
0x20bf   :  { %2632 = vtanh.f32 %v1918_v2 }
0x20c9   :  { %v2633_v3 = vpop.eup %2632 }
0x20ca   :  { %1922 = vrot.lane.b32.xlu1 %v2633_v3, %s2668_s2  ;;  %v2199_v3 = vld [vmem:[%s3234_s6] ss:$0 sm:$0xff] }
0x213c   :  { %v1923_v10 = vpop.permute.xlu1 %1922 }
0x213d   :  { %v1925_v27 = vmul.f32 %v1923_v10, %v1920_v6 }
0x213f   :  { %v1929_v5 = vadd.f32 %v1928_v0, %v1925_v27 }
0x2141   :  { %v1931_v8 = vrot.slane %v1929_v5, 4  ;;  %v2053_v46 = vrot.slane %v1929_v5, 6 }
0x2143   :  { %1932 = vrot.lane.b32.xlu0 %v1931_v8, %s2668_s2 }
0x21b5   :  { %v1933_v62 = vpop.permute.xlu0 %1932 }
0x21b6   :  { %2197 = vmatmul.mubr.msk.f32.vlgmr.msra.gmra.mrb[16].mxu1 %vm159_vm2, %v1933_v62 }
0x2289   :  { %v2002_v63 = vpop.f32.mrb[16].mxu1 }
0x228a   :  { %v2003_v11 = vadd.f32 %v2002_v63, %v2906_v15  ;;  %v2004_v13 = vpop.f32.mrb[17].mxu1 }
0x228b   :  { %v2005_v9 = vadd.f32 %v2004_v13, %v2911_v22 }
0x228c   :  { %v2007_v16 = vsel %vm1132_vm3, %v2003_v11, 0.0  ;;  %v2012_v17 = vmul.f32 %v2003_v11, %v2003_v11 }
0x228d   :  { %v2008_v18 = vsel %vm1134_vm4, %v2005_v9, 0.0  ;;  %v2013_v19 = vmul.f32 %v2005_v9, %v2005_v9 }
0x228e   :  { %v2009_v20 = vadd.f32 %v2008_v18, %v2007_v16  ;;  %v2014_v21 = vsel %vm1132_vm3, %v2012_v17, 0.0 }
0x228f   :  { %v2015_v23 = vsel %vm1134_vm4, %v2013_v19, 0.0 }
0x2290   :  { %2010 = vadd.xlane.f32.xlu1 %v2009_v20  ;;  %v2016_v24 = vadd.f32 %v2015_v23, %v2014_v21 }
0x2292   :  { %2017 = vadd.xlane.f32.xlu0 %v2016_v24 }
0x231d   :  { %v2011_v25 = vpop.xlane.xlu1 %2010 }
0x231e   :  { %v2019_v26 = vmul.f32 0.0052083335, %v2011_v25 }
0x231f   :  { %v2018_v30 = vpop.xlane.xlu0 %2017 }
0x2320   :  { %v2020_v15 = vmul.f32 192.0, %v2019_v26  ;;  %v2024_v12 = vsub.f32 %v2003_v11, %v2019_v26  ;;  %v2025_v41 = vsub.f32 %v2005_v9, %v2019_v26 }
0x2322   :  { %v2021_v29 = vmul.f32 %v2020_v15, %v2019_v26 }
0x2324   :  { %v2022_v22 = vsub.f32 %v2018_v30, %v2021_v29 }
0x2326   :  { %v2023_v31 = vmul.f32 0.005235602, %v2022_v22 }
0x2328   :  { %2634 = vrsqrt.f32 %v2023_v31 }
0x2332   :  { %v2635_v14 = vpop.eup %2634 }
0x2333   :  { %v2027_v32 = vmul.f32 %v2635_v14, %v2024_v12  ;;  %v2028_v43 = vmul.f32 %v2635_v14, %v2025_v41 }
0x2335   :  { %v2032_v33 = vrot.slane %v2027_v32, 2  ;;  %v2042_v47 = vrot.slane %v2028_v43, 2 }
0x2337   :  { %v2034_v36 = vadd.f32 %v2032_v33, %v2029_v35 }
0x2339   :  { %v2198_v38 = vmul.f32 -1.442695, %v2034_v36 }
0x233b   :  { %2636 = vpow2.f32 %v2198_v38 }
0x2345   :  { %v2637_v39 = vpop.eup %2636 }
0x2346   :  { %v2038_v40 = vadd.f32 1.0, %v2637_v39 }
0x2348   :  { %2638 = vrcp.f32 %v2038_v40 }
0x2352   :  { %v2639_v48 = vpop.eup %2638 }
0x2353   :  { %v2044_v49 = vmul.f32 %v2639_v48, %v2042_v47  ;;  %v2055_v50 = vmul.f32 %v2639_v48, %v2053_v46  ;;  %v2047_v58 = vsub.f32 1.0, %v2639_v48 }
0x2355   :  { %v2045_v44 = vadd.f32 %v2044_v49, %v2030_v4 }
0x2357   :  { %2640 = vtanh.f32 %v2045_v44 }
0x2361   :  { %v2641_v51 = vpop.eup %2640 }
0x2362   :  { %2049 = vrot.lane.b32.xlu1 %v2641_v51, %s2668_s2 }
0x23d4   :  { %v2050_v60 = vpop.permute.xlu1 %2049 }
0x23d5   :  { %v2052_v61 = vmul.f32 %v2050_v60, %v2047_v58 }
0x23d7   :  { %v2056_v0 = vadd.f32 %v2055_v50, %v2052_v61 }
0x23d9   :  { %v2073_v1 = vrot.slane %v2056_v0, 6 }
0x23db   :  { %2074 = vrot.lane.b32.xlu0 %v2073_v1, %s2668_s2 }
0x244d   :  { %v2075_v2 = vpop.permute.xlu0 %2074 }
0x244e   :  { %2227 = vmatmul.mubr.msk.f32.vlgmr.msra.gmra.mrb[18].mxu0 %vm159_vm2, %v2075_v2 }
0x2521   :  { %v2144_v6 = vpop.f32.mrb[18].mxu0 }
0x2522   :  { %v2145_v10 = vadd.f32 %v2199_v3, %v2144_v6  ;;  %v2228_v27 = vpop.f32.mrb[19].mxu0 }
0x2524   :  { %2149 = vst.msk [vmem:[#allocation4] sm:$0x3] %vm2148_vm6, %v2145_v10 }
0x2525   :  { %2654 = shalt.err (!%p2651_p4)
}
0x2526   :  { %s2655_s17 = scalar_lea.hbm %s3235_s7, 32 }
0x2527   :  { %p2656_p5 = scmp.ne.s32.totalorder %s3235_s7, %s2655_s17  ;;  %p2659_p6 = scmp.lt.u32.totalorder %s2655_s17, %s3235_s7 }
0x2529   :  { %p2661_p7 = pnand %p2659_p6, %p2656_p5 }
0x252b   :  { %2664 = shalt.err (!%p2661_p7)
}
0x252c   :  { %2159 = dma.vmem_to_hbm [thread:$0]  %s2157_s5, 32, %s3235_s7, [#allocation5]  }
0x252d   :  { %2665 = dma.done.wait [#allocation5], 32  }
0x252e   :  { %2666 = vsyncadd [#allocation5], 4294967264 }
0x252f   :  { %2163 = vsyncpa [#allocation5], 1 }

</bundles_post_ra>
